<compile_context>
chip_gen: v5e
topology: v5e:2x2
jax: 0.10.0
libtpu: 0.0.40
codegen_flags: <defaults>
</compile_context>

<pallas_src>
import functools

import jax
import jax.numpy as jnp
from jax.experimental import pallas as pl
from jax.experimental.pallas import tpu as pltpu


def _round_up(v, m):
    return ((v + m - 1) // m) * m


def conv_block_kernel(p_ref, w_ref, b_ref, g_ref, beta_ref, o_ref, *,
                      eps, negative_slope):
    # Conv3d as one MXU matmul over im2col patches (bf16 in, f32 accumulate).
    y = jnp.dot(p_ref[0], w_ref[...], preferred_element_type=jnp.float32)
    y = y + b_ref[...]                                   # conv bias (f32)

    # InstanceNorm3d: per-channel (lane) stats over all spatial rows (sublanes).
    mean = jnp.mean(y, axis=0, keepdims=True)
    var = jnp.mean(jnp.square(y - mean), axis=0, keepdims=True)
    y = (y - mean) * jax.lax.rsqrt(var + eps)
    y = y * g_ref[...] + beta_ref[...]                   # affine (gamma, beta)

    # LeakyReLU(negative_slope)
    o_ref[0] = jnp.where(y > 0, y, negative_slope * y).astype(o_ref.dtype)


def conv_block_forward(x, params, *, eps=1e-5, negative_slope=0.01):
    """x: [B, C_in, D, H, W] -> [B, C_out, D, H, W] (stride 1, 'same' padding)."""
    w, b, gamma, beta = params          # w in PyTorch layout [C_out, C_in, kD, kH, kW]
    B, C_in, D, H, W = x.shape
    C_out, _, kD, kH, kW = w.shape
    pD, pH, pW = kD // 2, kH // 2, kW // 2

    S = D * H * W                       # spatial rows per sample
    K = kD * kH * kW * C_in             # im2col contraction size
    K_pad = _round_up(max(K, 128), 128)
    C_pad = _round_up(max(C_out, 128), 128)
    assert S % 8 == 0, "spatial extent must be sublane-aligned (multiple of 8)"

    # ---- wrapper-side layout plumbing: channels-last, zero-pad, im2col ----
    xt = jnp.transpose(x, (0, 2, 3, 4, 1))                         # [B,D,H,W,C_in]
    xp = jnp.pad(xt, ((0, 0), (pD, pD), (pH, pH), (pW, pW), (0, 0)))
    cols = [xp[:, kd:kd + D, kh:kh + H, kw:kw + W, :]
            for kd in range(kD) for kh in range(kH) for kw in range(kW)]
    patches = jnp.concatenate(cols, axis=-1).reshape(B, S, K)      # [B,S,K]
    patches = jnp.pad(patches, ((0, 0), (0, 0), (0, K_pad - K)))
    patches = patches.astype(jnp.bfloat16)

    # weight: [O,I,kd,kh,kw] -> [kd,kh,kw,I,O] -> [K, O], matching patch column order.
    w_mat = jnp.transpose(w, (2, 3, 4, 1, 0)).reshape(K, C_out)
    w_mat = jnp.pad(w_mat, ((0, K_pad - K), (0, C_pad - C_out))).astype(jnp.bfloat16)

    def pad_row(v):
        return jnp.pad(v.reshape(1, C_out).astype(jnp.float32),
                       ((0, 0), (0, C_pad - C_out)))

    b_row, g_row, beta_row = pad_row(b), pad_row(gamma), pad_row(beta)

    kernel = functools.partial(conv_block_kernel, eps=eps,
                               negative_slope=negative_slope)

    flops = 2 * B * S * K_pad * C_pad + 10 * B * S * C_pad
    bytes_accessed = (B * S * K_pad * 2 + K_pad * C_pad * 2
                      + 3 * C_pad * 4 + B * S * C_pad * 4)

    out = pl.pallas_call(
        kernel,
        out_shape=jax.ShapeDtypeStruct((B, S, C_pad), jnp.float32),
        grid=(B,),
        in_specs=[
            pl.BlockSpec((1, S, K_pad), lambda i: (i, 0, 0)),   # per-sample patches
            pl.BlockSpec((K_pad, C_pad), lambda i: (0, 0)),     # resident weights
            pl.BlockSpec((1, C_pad), lambda i: (0, 0)),         # conv bias
            pl.BlockSpec((1, C_pad), lambda i: (0, 0)),         # gamma
            pl.BlockSpec((1, C_pad), lambda i: (0, 0)),         # beta
        ],
        out_specs=pl.BlockSpec((1, S, C_pad), lambda i: (i, 0, 0)),
        compiler_params=pltpu.CompilerParams(
            dimension_semantics=("parallel",),
            vmem_limit_bytes=32 * 1024 * 1024),
        cost_estimate=pl.CostEstimate(flops=flops,
                                      transcendentals=B * C_pad,
                                      bytes_accessed=bytes_accessed),
    )(patches, w_mat, b_row, g_row, beta_row)

    out = out[:, :, :C_out].reshape(B, D, H, W, C_out)             # drop lane pad
    return jnp.transpose(out, (0, 4, 1, 2, 3))                     # back to NCDHW


def conv_block_reference(x, params, *, eps=1e-5, negative_slope=0.01):
    """Pure-JAX f32 reference (PyTorch ConvBlock inference semantics)."""
    w, b, gamma, beta = params
    pD, pH, pW = w.shape[2] // 2, w.shape[3] // 2, w.shape[4] // 2
    y = jax.lax.conv_general_dilated(
        x, w, window_strides=(1, 1, 1),
        padding=((pD, pD), (pH, pH), (pW, pW)),
        dimension_numbers=("NCDHW", "OIDHW", "NCDHW"))
    y = y + b.reshape(1, -1, 1, 1, 1)
    mean = jnp.mean(y, axis=(2, 3, 4), keepdims=True)
    var = jnp.mean(jnp.square(y - mean), axis=(2, 3, 4), keepdims=True)
    y = (y - mean) * jax.lax.rsqrt(var + eps)
    y = y * gamma.reshape(1, -1, 1, 1, 1) + beta.reshape(1, -1, 1, 1, 1)
    return jnp.where(y > 0, y, negative_slope * y)


if __name__ == "__main__":
    key = jax.random.PRNGKey(0)
    k_x, k_w, k_b, k_g, k_beta = jax.random.split(key, 5)

    batch, in_channels, out_channels = 2, 4, 5
    D = H = W = 8

    x = jax.random.normal(k_x, (batch, in_channels, D, H, W), jnp.float32)

    fan_in = in_channels * 3 * 3 * 3
    bound = 1.0 / (fan_in ** 0.5)
    w = jax.random.uniform(k_w, (out_channels, in_channels, 3, 3, 3),
                           jnp.float32, -bound, bound)
    b = jax.random.uniform(k_b, (out_channels,), jnp.float32, -bound, bound)
    gamma = 1.0 + 0.1 * jax.random.normal(k_g, (out_channels,), jnp.float32)
    beta = 0.1 * jax.random.normal(k_beta, (out_channels,), jnp.float32)
    params = (w, b, gamma, beta)

    out = conv_block_forward(x, params)
    jax.block_until_ready(out)
    assert out.shape == (batch, out_channels, D, H, W)
    assert bool(jnp.all(jnp.isfinite(out)))

    ref = conv_block_reference(x, params)
    max_err = float(jnp.max(jnp.abs(out - ref)))
    assert max_err < 0.1, f"max abs error vs reference: {max_err}"

    print("KERNEL_OK")
</pallas_src>

<mosaic_0001>
module attributes {stable_mosaic.version = 11 : i64} {
  func.func @conv_block_kernel(%arg0: i32, %arg1: memref<1x512x128xbf16, #tpu.memory_space<vmem>>, %arg2: memref<128x128xbf16, #tpu.memory_space<vmem>>, %arg3: memref<1x128xf32, #tpu.memory_space<vmem>>, %arg4: memref<1x128xf32, #tpu.memory_space<vmem>>, %arg5: memref<1x128xf32, #tpu.memory_space<vmem>>, %arg6: memref<1x512x128xf32, #tpu.memory_space<vmem>>) attributes {dimension_semantics = [#tpu.dimension_semantics<parallel>], iteration_bounds = array<i64: 2>, scalar_prefetch = 0 : i64, scratch_operands = 0 : i64, tpu.core_type = #tpu.core_type<tc>, window_params = [{transform_indices = @transform_0, window_bounds = array<i64: 1, 512, 128>}, {pipeline_mode = #tpu.pipeline_mode<synchronous>, transform_indices = @transform_1, window_bounds = array<i64: 128, 128>}, {pipeline_mode = #tpu.pipeline_mode<synchronous>, transform_indices = @transform_2, window_bounds = array<i64: 1, 128>}, {pipeline_mode = #tpu.pipeline_mode<synchronous>, transform_indices = @transform_3, window_bounds = array<i64: 1, 128>}, {pipeline_mode = #tpu.pipeline_mode<synchronous>, transform_indices = @transform_4, window_bounds = array<i64: 1, 128>}, {transform_indices = @transform_5, window_bounds = array<i64: 1, 512, 128>}]} {
    %c0 = arith.constant 0 : index
    %c0_0 = arith.constant 0 : index
    %c0_1 = arith.constant 0 : index
    %0 = vector.load %arg1[%c0, %c0_0, %c0_1] : memref<1x512x128xbf16, #tpu.memory_space<vmem>>, vector<1x512x128xbf16>
    %1 = vector.shape_cast %0 : vector<1x512x128xbf16> to vector<512x128xbf16>
    %c0_2 = arith.constant 0 : index
    %c0_3 = arith.constant 0 : index
    %2 = vector.load %arg2[%c0_2, %c0_3] : memref<128x128xbf16, #tpu.memory_space<vmem>>, vector<128x128xbf16>
    %cst = arith.constant dense<0.000000e+00> : vector<512x128xf32>
    %3 = tpu.matmul %1, %2, %cst {dimension_numbers = #tpu.dot_dimension_numbers<[1], [0], [0], [1], [0, 0, 1, 1], [], []>} : vector<512x128xbf16>, vector<128x128xbf16>, vector<512x128xf32> -> vector<512x128xf32>
    %c0_4 = arith.constant 0 : index
    %c0_5 = arith.constant 0 : index
    %4 = vector.load %arg3[%c0_4, %c0_5] : memref<1x128xf32, #tpu.memory_space<vmem>>, vector<1x128xf32>
    %5 = vector.broadcast %4 : vector<1x128xf32> to vector<512x128xf32>
    %6 = arith.addf %3, %5 : vector<512x128xf32>
    %cst_6 = arith.constant dense<0.000000e+00> : vector<128xf32>
    %7 = vector.multi_reduction <add>, %6, %cst_6 [0] : vector<512x128xf32> to vector<128xf32>
    %8 = vector.shape_cast %7 : vector<128xf32> to vector<1x128xf32>
    %cst_7 = arith.constant 5.120000e+02 : f32
    %9 = vector.broadcast %cst_7 : f32 to vector<1x128xf32>
    %10 = arith.divf %8, %9 : vector<1x128xf32>
    %11 = vector.broadcast %10 : vector<1x128xf32> to vector<512x128xf32>
    %12 = arith.subf %6, %11 : vector<512x128xf32>
    %13 = arith.mulf %12, %12 : vector<512x128xf32>
    %cst_8 = arith.constant dense<0.000000e+00> : vector<128xf32>
    %14 = vector.multi_reduction <add>, %13, %cst_8 [0] : vector<512x128xf32> to vector<128xf32>
    %15 = vector.shape_cast %14 : vector<128xf32> to vector<1x128xf32>
    %cst_9 = arith.constant 5.120000e+02 : f32
    %16 = vector.broadcast %cst_9 : f32 to vector<1x128xf32>
    %17 = arith.divf %15, %16 : vector<1x128xf32>
    %18 = vector.broadcast %10 : vector<1x128xf32> to vector<512x128xf32>
    %19 = arith.subf %6, %18 : vector<512x128xf32>
    %cst_10 = arith.constant 9.99999974E-6 : f32
    %20 = vector.broadcast %cst_10 : f32 to vector<1x128xf32>
    %21 = arith.addf %17, %20 : vector<1x128xf32>
    %22 = math.rsqrt %21 : vector<1x128xf32>
    %23 = vector.broadcast %22 : vector<1x128xf32> to vector<512x128xf32>
    %24 = arith.mulf %19, %23 : vector<512x128xf32>
    %c0_11 = arith.constant 0 : index
    %c0_12 = arith.constant 0 : index
    %25 = vector.load %arg4[%c0_11, %c0_12] : memref<1x128xf32, #tpu.memory_space<vmem>>, vector<1x128xf32>
    %26 = vector.broadcast %25 : vector<1x128xf32> to vector<512x128xf32>
    %27 = arith.mulf %24, %26 : vector<512x128xf32>
    %c0_13 = arith.constant 0 : index
    %c0_14 = arith.constant 0 : index
    %28 = vector.load %arg5[%c0_13, %c0_14] : memref<1x128xf32, #tpu.memory_space<vmem>>, vector<1x128xf32>
    %29 = vector.broadcast %28 : vector<1x128xf32> to vector<512x128xf32>
    %30 = arith.addf %27, %29 : vector<512x128xf32>
    %cst_15 = arith.constant 0.000000e+00 : f32
    %31 = vector.broadcast %cst_15 : f32 to vector<512x128xf32>
    %32 = arith.cmpf ogt, %30, %31 : vector<512x128xf32>
    %cst_16 = arith.constant 0.00999999977 : f32
    %33 = vector.broadcast %cst_16 : f32 to vector<512x128xf32>
    %34 = arith.mulf %33, %30 : vector<512x128xf32>
    %35 = arith.select %32, %30, %34 : vector<512x128xi1>, vector<512x128xf32>
    %c0_17 = arith.constant 0 : index
    %c0_18 = arith.constant 0 : index
    %c0_19 = arith.constant 0 : index
    %36 = vector.load %arg6[%c0_17, %c0_18, %c0_19] : memref<1x512x128xf32, #tpu.memory_space<vmem>>, vector<1x512x128xf32>
    %37 = vector.shape_cast %36 : vector<1x512x128xf32> to vector<512x128xf32>
    %38 = vector.shape_cast %35 : vector<512x128xf32> to vector<1x512x128xf32>
    tpu.vector_store %arg6[%c0_17, %c0_18, %c0_19], %38 {strides = array<i32>} : memref<1x512x128xf32, #tpu.memory_space<vmem>>, vector<1x512x128xf32>,
    return
  }
  func.func @transform_0(%arg0: i32) -> (i32, i32, i32) {
    %c0_i32 = arith.constant 0 : i32
    %c0_i32_0 = arith.constant 0 : i32
    %c0_i32_1 = arith.constant 0 : i32
    return %arg0, %c0_i32, %c0_i32_0 : i32, i32, i32
  }
  func.func @transform_1(%arg0: i32) -> (i32, i32) {
    %c0_i32 = arith.constant 0 : i32
    %c0_i32_0 = arith.constant 0 : i32
    %c0_i32_1 = arith.constant 0 : i32
    return %c0_i32, %c0_i32_0 : i32, i32
  }
  func.func @transform_2(%arg0: i32) -> (i32, i32) {
    %c0_i32 = arith.constant 0 : i32
    %c0_i32_0 = arith.constant 0 : i32
    %c0_i32_1 = arith.constant 0 : i32
    return %c0_i32, %c0_i32_0 : i32, i32
  }
  func.func @transform_3(%arg0: i32) -> (i32, i32) {
    %c0_i32 = arith.constant 0 : i32
    %c0_i32_0 = arith.constant 0 : i32
    %c0_i32_1 = arith.constant 0 : i32
    return %c0_i32, %c0_i32_0 : i32, i32
  }
  func.func @transform_4(%arg0: i32) -> (i32, i32) {
    %c0_i32 = arith.constant 0 : i32
    %c0_i32_0 = arith.constant 0 : i32
    %c0_i32_1 = arith.constant 0 : i32
    return %c0_i32, %c0_i32_0 : i32, i32
  }
  func.func @transform_5(%arg0: i32) -> (i32, i32, i32) {
    %c0_i32 = arith.constant 0 : i32
    %c0_i32_0 = arith.constant 0 : i32
    %c0_i32_1 = arith.constant 0 : i32
    return %arg0, %c0_i32, %c0_i32_0 : i32, i32, i32
  }
}

</mosaic_0001>

<bundles_post_ra>
// kernel: tpu_custom_call.1
= control target key start
LH: loop header
LB: loop body
LE: loop exit
PB: predicated region body
PF: predicated region fallthrough
CT: control target
= control target key end

     0   :  { %10 = vsyncpa [#allocation3], 0  ;;  %s3645_s0 = inlined_call_operand.hbm [shape: bf16[2,512,128], index: 0, kind: input, shape index: {}]   ;;  %s3646_s1 = inlined_call_operand.hbm [shape: bf16[128,128], index: 1, kind: input, shape index: {}]   ;;  %s3647_s2 = inlined_call_operand.vmem [shape: f32[1,128], index: 2, kind: input, shape index: {}]   ;;  %s3648_s3 = inlined_call_operand.vmem [shape: f32[1,128], index: 3, kind: input, shape index: {}]   ;;  %s3649_s4 = inlined_call_operand.vmem [shape: f32[1,128], index: 4, kind: input, shape index: {}]   ;;  %s3650_s5 = inlined_call_operand.hbm [shape: f32[2,512,128], index: 5, kind: output, shape index: {}]  }
   0x1   :  { %12 = vsyncpa [#allocation3 + $0x1], 0 }
   0x2   :  { %13 = vsyncpa [#allocation6], 0 }
   0x3   :  { %14 = vsyncpa [#allocation4], 0 }
   0x4   :  { %16 = vsyncpa [#allocation4 + $0x1], 0  ;;  %s2075_s18 = smov 0   ;;  %s2077_s19 = smov 0  }
   0x5   :  { %s2079_s20 = smov 0   ;;  %s2081_s21 = smov 0  }
   0x6 LB: > { %s2096_s22 = sadd.s32 4294967295, %s2037_s21   ;;  %s1596_s23 = sadd.s32 4294967294, %s2037_s21   ;;  %s2037_s21 = sphi %s2081_s21, %s3848_s21   ;;  %s2033_s20 = sphi %s2079_s20, %s3847_s20   ;;  %s2029_s19 = sphi %s2077_s19, %s3846_s19   ;;  %s2025_s18 = sphi %s2075_s18, %s3845_s18  }
   0x7   : > { %p42_p0 = scmp.ne.s32.totalorder %s2029_s19, %s2025_s18  ;;  %p43_p1 = scmp.eq.s32.totalorder %s2096_s22, 0 }
   0x8   : > { %p150_p2 = scmp.eq.s32.totalorder %s2096_s22, 1  ;;  %p156_p3 = scmp.eq.s32.totalorder %s1596_s23, 1 }
   0x9   : > { %p2105_p4 = por %p43_p1, %p42_p0  ;;  %p1597_p5 = scmp.ge.s32.totalorder %s2037_s21, 1 }
   0xa   : > { %p2110_p6 = por %p156_p3, %p42_p0  ;;  %p163_p7 = scmp.lt.s32.totalorder %s2037_s21, 3 }
   0xb   : > { %s174_s28 = sshll.u32 %s3646_s1, 4  ;;  %s2039_s30 = smov [#allocation5]   ;;  %s175_s28 = int_to_ptr.hbm [resolvable:$true] %s174_s28 }
   0xc   : > { %p2118_p8 = pnand %p1597_p5, %p163_p7  ;;  %s176_s6 = sshll.u32 %s2039_s30, 4  ;;  %s177_s6 = int_to_ptr.vmem [resolvable:$true] %s176_s6 }
   0xd   : > { %s2128_s7 = sadd.s32 1, %s2037_s21   ;;  %s3651_s8 = smov 64  }
   0xe   : > { %p1846_p9 = pneg %p2118_p8  ;;  %s2041_s9 = smov 4  }
   0xf   : > { %s26_s10 = ssub.s32 %s2037_s21, %s2128_s7  ;;  %s29_s11 = sadd.s32 1, %s2033_s20 }
  0x10   : > { %p1847_p10 = pnand %p1846_p9, %p43_p1  ;;  %p27_p12 = scmp.eq.s32.totalorder %s26_s10, 0 }
  0x11   : > { %p36_p13 = scmp.ne.s32.totalorder %s2033_s20, %s2029_s19  ;;  %p37_p0 = scmp.eq.s32.totalorder %s2037_s21, 0 }
  0x12   : > { %1849 = dma.hbm_to_vmem [thread:$0]  (!%p1847_p10), %s175_s28, 1024, %s177_s6, [#allocation6], %s3651_s8, %s3651_s8, %s2041_s9  }
  0x13   : > { %s2140_s12 = scalar_select %p27_p12, %s2033_s20, %s29_s11  }
  0x14   : > { %p2144_p3 = por %p150_p2, %p36_p13  ;;  %p1859_p5 = scmp.lt.s32.totalorder %s2037_s21, 2 }
  0x15   : > { %s199_s14 = sand.u32 1, %s2033_s20   ;;  %s1772_s15 = sshll.u32 %s2037_s21, 8 }
  0x16   : > { %p38_p7 = por %p37_p0, %p36_p13  ;;  %s1600_s16 = sshll.u32 %s199_s14, 8 }
  0x17   : > { %s208_s26 = scalar_lea.hbm %s3645_s0, %s1772_s15  ;;  %s203_s28 = scalar_lea.vmem [#allocation2], %s1600_s16 }
  0x18   : > { %s209_s27 = sshll.u32 %s208_s26, 4  ;;  %s211_s30 = sshll.u32 %s203_s28, 4  ;;  %s210_s27 = int_to_ptr.hbm [resolvable:$true] %s209_s27  ;;  %s212_s30 = int_to_ptr.vmem [resolvable:$true] %s211_s30 }
  0x19   : > { %p2154_p9 = pnand %p1859_p5, %p38_p7  ;;  %s200_s10 = scalar_lea.sflag [#allocation3], %s199_s14 }
  0x1a   : > { %s1937_s11 = sshra.s32 %s210_s27, 4  ;;  %s1944_s16 = scalar_lea.hbm %s3645_s0, 512  ;;  %s1938_s11 = int_to_ptr.hbm [resolvable:$true] %s1937_s11 }
  0x1b   : > { %s1939_s8 = scalar_lea.hbm %s1938_s11, 256  ;;  %p1941_p10 = pneg %p2154_p9 }
  0x1c   : > { %p1940_p2 = scmp.ne.s32.totalorder %s1938_s11, %s1939_s8  ;;  %p1945_p0 = scmp.lt.s32.totalorder %s1938_s11, %s3645_s0 }
  0x1d   : > { %p1946_p5 = scmp.lt.s32.totalorder %s1944_s16, %s1939_s8 }
  0x1e   : > { %p1942_p12 = pnand %p1941_p10, %p1940_p2 }
  0x1f   : > { %p1947_p7 = por %p1946_p5, %p1945_p0 }
  0x20   : > { %p1943_p13 = pneg %p1942_p12 }
  0x22   : > { %p1948_p11 = pnand %p1947_p7, %p1943_p13 }
  0x24   : > { %1951 = shalt.err (!%p1948_p11)
}
  0x25   : > { %s3715_s14 = smov 64   ;;  %223 = sbr.rel (%p2118_p8) target bundleno = 734 (0x2de), region = 40 }
  0x26   : > { %1853 = dma.hbm_to_vmem [thread:$0]  (!%p2154_p9), %s210_s27, 4096, %s212_s30, %s200_s10, %s3715_s14, %s3715_s14, %s2041_s9  }
  0x2a   : > { %s2174_s28 = sand.u32 1, %s2029_s19  }
  0x2b   : > { %s1604_s11 = sshll.u32 %s2174_s28, 8  ;;  %s226_s8 = scalar_lea.sflag [#allocation3], %s2174_s28 }
  0x2c   : > { %s2178_s15 = scalar_lea.vmem [#allocation2], %s1604_s11 }
  0x2d   : > { %2012 = dma.done.wait (%p2105_p4), %s226_s8, 4096  }
  0x2e   : > { %2014 = vsyncadd (%p2105_p4), %s226_s8, 4294963200 }
  0x2f   : > { %2016 = dma.done.wait (%p43_p1), [#allocation6], 1024  }
  0x30   : > { %2018 = vsyncadd (%p43_p1), [#allocation6], 4294966272  ;;  %v1812_v0 = vld [vmem:[#allocation5 + $0x38] sm:$0xff]  ;;  %v1811_v1 = vld [vmem:[#allocation5 + $0x30] sm:$0xff]  ;;  %s1606_s10 = sshll.u32 %s2174_s28, 9  ;;  %s1813_s16 = sshll.u32 %s2096_s22, 9 }
  0x31   : > { %586 = vmatpush.bf16.msra.mxu0 %v1812_v0  ;;  %1814 = vmatpush.bf16.msra.mxu1 %v1812_v0  ;;  %v1810_v2 = vld [vmem:[#allocation5 + $0x28] sm:$0xff]  ;;  %v1809_v3 = vld [vmem:[#allocation5 + $0x20] sm:$0xff]  ;;  %v1808_v4 = vld [vmem:[#allocation5 + $0x18] sm:$0xff]  ;;  %s3011_s17 = scalar_lea.vmem [#allocation7], %s1606_s10  ;;  %s1509_s26 = scalar_lea.hbm %s3650_s5, %s1813_s16 }
  0x32   : > { %1815 = vmatpush.bf16.msra.mxu2 %v1812_v0  ;;  %1816 = vmatpush.bf16.msra.mxu3 %v1812_v0  ;;  %v1807_v5 = vld [vmem:[#allocation5 + $0x10] sm:$0xff]  ;;  %v1806_v6 = vld [vmem:[#allocation5 + $0x8] sm:$0xff]  ;;  %v1805_v7 = vld [vmem:[#allocation5] sm:$0xff]  ;;  %s1510_s14 = sshll.u32 %s3011_s17, 4  ;;  %s1512_s11 = sshll.u32 %s1509_s26, 4  ;;  %s1511_s14 = int_to_ptr.vmem [resolvable:$true] %s1510_s14  ;;  %s1513_s11 = int_to_ptr.hbm [resolvable:$true] %s1512_s11 }
  0x33   : > { %v1773_v8 = vld [vmem:[%s2178_s15] sm:$0xff]  ;;  %v1774_v10 = vld [vmem:[%s2178_s15 + $0x8] sm:$0xff]  ;;  %v1775_v13 = vld [vmem:[%s2178_s15 + $0x10] sm:$0xff]  ;;  %s1498_s8 = scalar_lea.sflag [#allocation4], %s2174_s28  ;;  %s1987_s27 = scalar_lea.hbm %s3650_s5, 1024 }
  0x34   : > { %v1781_v9 = vld [vmem:[%s2178_s15 + $0x40] sm:$0xff]  ;;  %v1782_v11 = vld [vmem:[%s2178_s15 + $0x48] sm:$0xff]  ;;  %v1783_v14 = vld [vmem:[%s2178_s15 + $0x50] sm:$0xff] }
  0x35   : > { %587 = vmatpush.bf16.msra.mxu0 %v1811_v1  ;;  %1817 = vmatpush.bf16.msra.mxu1 %v1811_v1  ;;  %v1789_v12 = vld [vmem:[%s2178_s15 + $0x80] sm:$0xff]  ;;  %v1790_v15 = vld [vmem:[%s2178_s15 + $0x88] sm:$0xff]  ;;  %v1776_v16 = vld [vmem:[%s2178_s15 + $0x18] sm:$0xff] }
  0x36   : > { %1818 = vmatpush.bf16.msra.mxu2 %v1811_v1  ;;  %1819 = vmatpush.bf16.msra.mxu3 %v1811_v1  ;;  %v1784_v17 = vld [vmem:[%s2178_s15 + $0x58] sm:$0xff]  ;;  %v1791_v18 = vld [vmem:[%s2178_s15 + $0x90] sm:$0xff]  ;;  %v1797_v19 = vld [vmem:[%s2178_s15 + $0xc0] sm:$0xff] }
  0x37   : > { %v1777_v20 = vld [vmem:[%s2178_s15 + $0x20] sm:$0xff]  ;;  %v1792_v22 = vld [vmem:[%s2178_s15 + $0x98] sm:$0xff]  ;;  %v1798_v23 = vld [vmem:[%s2178_s15 + $0xc8] sm:$0xff] }
  0x38   : > { %v1785_v21 = vld [vmem:[%s2178_s15 + $0x60] sm:$0xff]  ;;  %v1778_v24 = vld [vmem:[%s2178_s15 + $0x28] sm:$0xff]  ;;  %v1799_v27 = vld [vmem:[%s2178_s15 + $0xd0] sm:$0xff] }
  0x39   : > { %588 = vmatpush.bf16.msra.mxu0 %v1810_v2  ;;  %1820 = vmatpush.bf16.msra.mxu1 %v1810_v2  ;;  %v1786_v25 = vld [vmem:[%s2178_s15 + $0x68] sm:$0xff]  ;;  %v1793_v26 = vld [vmem:[%s2178_s15 + $0xa0] sm:$0xff]  ;;  %v1779_v28 = vld [vmem:[%s2178_s15 + $0x30] sm:$0xff] }
  0x3a   : > { %1821 = vmatpush.bf16.msra.mxu2 %v1810_v2  ;;  %1822 = vmatpush.bf16.msra.mxu3 %v1810_v2  ;;  %v1787_v29 = vld [vmem:[%s2178_s15 + $0x70] sm:$0xff]  ;;  %v1794_v30 = vld [vmem:[%s2178_s15 + $0xa8] sm:$0xff]  ;;  %v1800_v31 = vld [vmem:[%s2178_s15 + $0xd8] sm:$0xff] }
  0x3b   : > { %v1780_v32 = vld [vmem:[%s2178_s15 + $0x38] sm:$0xff]  ;;  %v1795_v34 = vld [vmem:[%s2178_s15 + $0xb0] sm:$0xff]  ;;  %v1801_v35 = vld [vmem:[%s2178_s15 + $0xe0] sm:$0xff] }
  0x3c   : > { %v1788_v33 = vld [vmem:[%s2178_s15 + $0x78] sm:$0xff]  ;;  %v1802_v39 = vld [vmem:[%s2178_s15 + $0xe8] sm:$0xff]  ;;  %v1803_v43 = vld [vmem:[%s2178_s15 + $0xf0] sm:$0xff] }
  0x3d   : > { %589 = vmatpush.bf16.msra.mxu0 %v1809_v3  ;;  %1823 = vmatpush.bf16.msra.mxu1 %v1809_v3  ;;  %v1796_v38 = vld [vmem:[%s2178_s15 + $0xb8] sm:$0xff] }
  0x3e   : > { %1824 = vmatpush.bf16.msra.mxu2 %v1809_v3  ;;  %1825 = vmatpush.bf16.msra.mxu3 %v1809_v3  ;;  %v1804_v49 = vld [vmem:[%s2178_s15 + $0xf8] sm:$0xff]  ;;  %s1981_s15 = sshra.s32 %s1513_s11, 4  ;;  %s1982_s15 = int_to_ptr.hbm [resolvable:$true] %s1981_s15 }
  0x3f   : > { %s1983_s24 = scalar_lea.hbm %s1982_s15, 512  ;;  %p1988_p11 = scmp.lt.s32.totalorder %s1982_s15, %s3650_s5 }
  0x40   : > { %p1984_p1 = scmp.ne.s32.totalorder %s1982_s15, %s1983_s24  ;;  %p1989_p9 = scmp.lt.s32.totalorder %s1987_s27, %s1983_s24 }
  0x41   : > { %590 = vmatpush.bf16.msra.mxu0 %v1808_v4  ;;  %1826 = vmatpush.bf16.msra.mxu1 %v1808_v4 }
  0x42   : > { %1827 = vmatpush.bf16.msra.mxu2 %v1808_v4  ;;  %1828 = vmatpush.bf16.msra.mxu3 %v1808_v4  ;;  %p1985_p4 = pnand %p1984_p1, %p2144_p3  ;;  %p1990_p2 = por %p1989_p9, %p1988_p11 }
  0x44   : > { %p1986_p8 = pneg %p1985_p4 }
  0x45   : > { %591 = vmatpush.bf16.msra.mxu0 %v1807_v5  ;;  %1829 = vmatpush.bf16.msra.mxu1 %v1807_v5 }
  0x46   : > { %1830 = vmatpush.bf16.msra.mxu2 %v1807_v5  ;;  %1831 = vmatpush.bf16.msra.mxu3 %v1807_v5  ;;  %p1991_p10 = pnand %p1990_p2, %p1986_p8 }
  0x49   : > { %592 = vmatpush.bf16.msra.mxu0 %v1806_v6  ;;  %1832 = vmatpush.bf16.msra.mxu1 %v1806_v6 }
  0x4a   : > { %1833 = vmatpush.bf16.msra.mxu2 %v1806_v6  ;;  %1834 = vmatpush.bf16.msra.mxu3 %v1806_v6  ;;  %v2259_v6 = vld [vmem:[%s3647_s2] ss:$0 sm:$0xff] }
  0x4d   : > { %593 = vmatpush.bf16.msra.mxu0 %v1805_v7  ;;  %1835 = vmatpush.bf16.msra.mxu1 %v1805_v7 }
  0x4e   : > { %1836 = vmatpush.bf16.msra.mxu2 %v1805_v7  ;;  %1837 = vmatpush.bf16.msra.mxu3 %v1805_v7 }
  0x50   : > { %594 = vmatmul.bf16.vlgmr.msra.gmra.mxu0 %v1773_v8  ;;  %634 = vmatmul.bf16.vlgmr.msra.gmra.mxu1 %v1781_v9 }
  0x51   : > { %674 = vmatmul.bf16.vlgmr.msra.gmra.mxu2 %v1789_v12  ;;  %714 = vmatmul.bf16.vlgmr.msra.gmra.mxu3 %v1797_v19 }
  0x60   : > { %599 = vmatmul.bf16.gmra.mxu0 %v1774_v10  ;;  %639 = vmatmul.bf16.gmra.mxu1 %v1782_v11 }
  0x61   : > { %679 = vmatmul.bf16.gmra.mxu2 %v1790_v15  ;;  %719 = vmatmul.bf16.gmra.mxu3 %v1798_v23 }
  0x70   : > { %604 = vmatmul.bf16.gmra.mxu0 %v1775_v13  ;;  %644 = vmatmul.bf16.gmra.mxu1 %v1783_v14 }
  0x71   : > { %684 = vmatmul.bf16.gmra.mxu2 %v1791_v18  ;;  %724 = vmatmul.bf16.gmra.mxu3 %v1799_v27 }
  0x80   : > { %609 = vmatmul.bf16.gmra.mxu0 %v1776_v16  ;;  %649 = vmatmul.bf16.gmra.mxu1 %v1784_v17 }
  0x81   : > { %689 = vmatmul.bf16.gmra.mxu2 %v1792_v22  ;;  %729 = vmatmul.bf16.gmra.mxu3 %v1800_v31 }
  0x90   : > { %614 = vmatmul.bf16.gmra.mxu0 %v1777_v20  ;;  %654 = vmatmul.bf16.gmra.mxu1 %v1785_v21 }
  0x91   : > { %694 = vmatmul.bf16.gmra.mxu2 %v1793_v26  ;;  %734 = vmatmul.bf16.gmra.mxu3 %v1801_v35 }
  0xa0   : > { %619 = vmatmul.bf16.gmra.mxu0 %v1778_v24  ;;  %659 = vmatmul.bf16.gmra.mxu1 %v1786_v25 }
  0xa1   : > { %699 = vmatmul.bf16.gmra.mxu2 %v1794_v30  ;;  %739 = vmatmul.bf16.gmra.mxu3 %v1802_v39 }
  0xb0   : > { %624 = vmatmul.bf16.gmra.mxu0 %v1779_v28  ;;  %664 = vmatmul.bf16.gmra.mxu1 %v1787_v29 }
  0xb1   : > { %704 = vmatmul.bf16.gmra.mxu2 %v1795_v34  ;;  %744 = vmatmul.bf16.gmra.mxu3 %v1803_v43 }
  0xc0   : > { %629 = vmatmul.bf16.gmra.mxu0 %v1780_v32  ;;  %669 = vmatmul.bf16.gmra.mxu1 %v1788_v33 }
  0xc1   : > { %709 = vmatmul.bf16.gmra.mxu2 %v1796_v38  ;;  %749 = vmatmul.bf16.gmra.mxu3 %v1804_v49 }
  0xcd   : > { %v595_v36 = vpop.f32.mrf.mxu0  ;;  %v2216_v37 = vpop.f32.mrf.mxu1 }
  0xce   : > { %v2269_v10 = vadd.f32 %v2259_v6, %v595_v36 }
  0xd4   : > { %v2227_v48 = vpop.f32.mrf.mxu2  ;;  %v2242_v60 = vpop.f32.mrf.mxu3 }
  0xd5   : > { %v597_v40 = vpop.f32.mrf.mxu0  ;;  %v2220_v41 = vpop.f32.mrf.mxu1 }
  0xd6   : > { %v2264_v8 = vadd.f32 %v2259_v6, %v597_v40 }
  0xd8   : > { %v755_v13 = vadd.f32 %v2264_v8, %v2269_v10 }
  0xdc   : > { %v2232_v52 = vpop.f32.mrf.mxu2  ;;  %v2248_v0 = vpop.f32.mrf.mxu3 }
  0xdd   : > { %v600_v42 = vpop.f32.mrf.mxu0  ;;  %v2223_v44 = vpop.f32.mrf.mxu1 }
  0xde   : > { %v2272_v11 = vadd.f32 %v2259_v6, %v600_v42 }
  0xe0   : > { %v756_v16 = vadd.f32 %v755_v13, %v2272_v11  ;;  %v2342_v13 = vadd.f32 %v2259_v6, %v2216_v37 }
  0xe4   : > { %v2236_v55 = vpop.f32.mrf.mxu2  ;;  %v2254_v4 = vpop.f32.mrf.mxu3 }
  0xe5   : > { %v602_v45 = vpop.f32.mrf.mxu0  ;;  %v2225_v46 = vpop.f32.mrf.mxu1 }
  0xe6   : > { %v2279_v14 = vadd.f32 %v2259_v6, %v602_v45  ;;  %v2359_v37 = vadd.f32 %v2259_v6, %v2225_v46 }
  0xe8   : > { %v757_v18 = vadd.f32 %v756_v16, %v2279_v14 }
  0xec   : > { %v2240_v58 = vpop.f32.mrf.mxu2  ;;  %v2274_v12 = vpop.f32.mrf.mxu3 }
  0xed   : > { %v605_v47 = vpop.f32.mrf.mxu0  ;;  %v2230_v51 = vpop.f32.mrf.mxu1 }
  0xee   : > { %v2283_v17 = vadd.f32 %v2259_v6, %v605_v47 }
  0xf0   : > { %v758_v21 = vadd.f32 %v757_v18, %v2283_v17  ;;  %v2349_v18 = vadd.f32 %v2259_v6, %v2220_v41 }
  0xf4   : > { %v2246_v63 = vpop.f32.mrf.mxu2  ;;  %v2299_v27 = vpop.f32.mrf.mxu3 }
  0xf5   : > { %v607_v50 = vpop.f32.mrf.mxu0  ;;  %v2234_v54 = vpop.f32.mrf.mxu1 }
  0xf6   : > { %v2287_v19 = vadd.f32 %v2259_v6, %v607_v50 }
  0xf8   : > { %v759_v24 = vadd.f32 %v758_v21, %v2287_v19 }
  0xfc   : > { %v2252_v3 = vpop.f32.mrf.mxu2  ;;  %v2323_v43 = vpop.f32.mrf.mxu3 }
  0xfd   : > { %v610_v53 = vpop.f32.mrf.mxu0  ;;  %v2238_v57 = vpop.f32.mrf.mxu1 }
  0xfe   : > { %v2291_v22 = vadd.f32 %v2259_v6, %v610_v53  ;;  %v2376_v46 = vadd.f32 %v2259_v6, %v2238_v57 }
 0x100   : > { %v760_v28 = vadd.f32 %v759_v24, %v2291_v22  ;;  %v2354_v24 = vadd.f32 %v2259_v6, %v2223_v44  ;;  %v2369_v44 = vadd.f32 %v2259_v6, %v2234_v54 }
 0x104   : > { %v2266_v9 = vpop.f32.mrf.mxu2  ;;  %v2345_v16 = vpop.f32.mrf.mxu3 }
 0x105   : > { %v612_v56 = vpop.f32.mrf.mxu0  ;;  %v2244_v61 = vpop.f32.mrf.mxu1 }
 0x106   : > { %v2297_v25 = vadd.f32 %v2259_v6, %v612_v56 }
 0x108   : > { %v761_v30 = vadd.f32 %v760_v28, %v2297_v25 }
 0x10c   : > { %v2293_v23 = vpop.f32.mrf.mxu2 }
 0x10d   : > { %v615_v59 = vpop.f32.mrf.mxu0  ;;  %v2250_v2 = vpop.f32.mrf.mxu1 }
 0x10e   : > { %v2303_v29 = vadd.f32 %v2259_v6, %v615_v59  ;;  %v2386_v54 = vadd.f32 %v2259_v6, %v2250_v2 }
 0x110   : > { %v762_v32 = vadd.f32 %v761_v30, %v2303_v29 }
 0x114   : > { %v2317_v39 = vpop.f32.mrf.mxu2 }
 0x115   : > { %v617_v62 = vpop.f32.mrf.mxu0  ;;  %v2261_v7 = vpop.f32.mrf.mxu1 }
 0x116   : > { %v2307_v31 = vadd.f32 %v2259_v6, %v617_v62 }
 0x118   : > { %v763_v35 = vadd.f32 %v762_v32, %v2307_v31  ;;  %v2364_v32 = vadd.f32 %v2259_v6, %v2230_v51  ;;  %v2381_v51 = vadd.f32 %v2259_v6, %v2244_v61 }
 0x11d   : > { %v620_v1 = vpop.f32.mrf.mxu0  ;;  %v660_v20 = vpop.f32.mrf.mxu1 }
 0x11e   : > { %v2311_v33 = vadd.f32 %v2259_v6, %v620_v1 }
 0x120   : > { %v764_v40 = vadd.f32 %v763_v35, %v2311_v33 }
 0x125   : > { %v622_v5 = vpop.f32.mrf.mxu0  ;;  %v662_v34 = vpop.f32.mrf.mxu1 }
 0x126   : > { %v2315_v36 = vadd.f32 %v2259_v6, %v622_v5  ;;  %v2338_v5 = vpop.f32.mrf.mxu2  ;;  %v2401_v2 = vadd.f32 %v2259_v6, %v662_v34 }
 0x128   : > { %v765_v45 = vadd.f32 %v764_v40, %v2315_v36  ;;  %v2372_v40 = vpop.f32.mrf.mxu3  ;;  %3717 = vst [vmem:[#allocation12_spill] sm:$0xff] %v2401_v2 }
 0x12d   : > { %v625_v15 = vpop.f32.mrf.mxu0  ;;  %v665_v59 = vpop.f32.mrf.mxu1 }
 0x12e   : > { %v2321_v42 = vadd.f32 %v2259_v6, %v625_v15  ;;  %v700_v35 = vpop.f32.mrf.mxu2 }
 0x130   : > { %v766_v49 = vadd.f32 %v765_v45, %v2321_v42 }
 0x135   : > { %v627_v26 = vpop.f32.mrf.mxu0  ;;  %v667_v30 = vpop.f32.mrf.mxu1 }
 0x136   : > { %v2327_v47 = vadd.f32 %v2259_v6, %v627_v26 }
 0x138   : > { %v767_v53 = vadd.f32 %v766_v49, %v2327_v47 }
 0x13d   : > { %v630_v38 = vpop.f32.mrf.mxu0 }
 0x13e   : > { %v2331_v50 = vadd.f32 %v2259_v6, %v630_v38 }
 0x140   : > { %v768_v62 = vadd.f32 %v767_v53, %v2331_v50 }
 0x145   : > { %v632_v56 = vpop.f32.mrf.mxu0 }
 0x146   : > { %v2336_v1 = vadd.f32 %v2259_v6, %v632_v56  ;;  %v670_v56 = vpop.f32.mrf.mxu1 }
 0x148   : > { %v769_v15 = vadd.f32 %v768_v62, %v2336_v1  ;;  %v2391_v62 = vadd.f32 %v2259_v6, %v2261_v7 }
 0x14a   : > { %v770_v21 = vadd.f32 %v769_v15, %v2342_v13  ;;  %v702_v15 = vpop.f32.mrf.mxu2 }
 0x14c   : > { %v771_v26 = vadd.f32 %v770_v21, %v2349_v18  ;;  %v2395_v21 = vadd.f32 %v2259_v6, %v660_v20 }
 0x14e   : > { %v772_v28 = vadd.f32 %v771_v26, %v2354_v24  ;;  %3716 = vst [vmem:[#allocation11_spill] sm:$0xff] %v2395_v21  ;;  %v2398_v26 = vpop.f32.mrf.mxu3  ;;  %v672_v20 = vpop.f32.mrf.mxu1 }
 0x150   : > { %v773_v41 = vadd.f32 %v772_v28, %v2359_v37 }
 0x152   : > { %v774_v38 = vadd.f32 %v773_v41, %v2364_v32  ;;  %v2405_v41 = vadd.f32 %v2259_v6, %v665_v59  ;;  %v705_v34 = vpop.f32.mrf.mxu2 }
 0x154   : > { %v775_v45 = vadd.f32 %v774_v38, %v2369_v44  ;;  %3718 = vst [vmem:[#allocation13_spill] sm:$0xff] %v2405_v41 }
 0x156   : > { %v776_v49 = vadd.f32 %v775_v45, %v2376_v46  ;;  %v2410_v45 = vadd.f32 %v2259_v6, %v667_v30  ;;  %v737_v59 = vpop.f32.mrf.mxu3 }
 0x158   : > { %v777_v53 = vadd.f32 %v776_v49, %v2381_v51  ;;  %3719 = vst [vmem:[#allocation14_spill] sm:$0xff] %v2410_v45 }
 0x15a   : > { %v778_v57 = vadd.f32 %v777_v53, %v2386_v54  ;;  %v2414_v53 = vadd.f32 %v2259_v6, %v670_v56 }
 0x15c   : > { %v779_v61 = vadd.f32 %v778_v57, %v2391_v62  ;;  %3720 = vst [vmem:[#allocation15_spill] sm:$0xff] %v2414_v53 }
 0x15e   : > { %v780_v28 = vadd.f32 %v779_v61, %v2395_v21  ;;  %v2418_v61 = vadd.f32 %v2259_v6, %v672_v20 }
 0x160   : > { %v781_v7 = vadd.f32 %v780_v28, %v2401_v2  ;;  %3721 = vst [vmem:[#allocation16_spill] sm:$0xff] %v2418_v61  ;;  %v2422_v28 = vadd.f32 %v2259_v6, %v2227_v48 }
 0x162   : > { %v782_v38 = vadd.f32 %v781_v7, %v2405_v41  ;;  %3722 = vst [vmem:[#allocation17_spill] sm:$0xff] %v2422_v28  ;;  %v2427_v7 = vadd.f32 %v2259_v6, %v2232_v52 }
 0x164   : > { %v783_v49 = vadd.f32 %v782_v38, %v2410_v45  ;;  %3723 = vst [vmem:[#allocation18_spill] sm:$0xff] %v2427_v7  ;;  %v2432_v38 = vadd.f32 %v2259_v6, %v2236_v55  ;;  %v2447_v55 = vadd.f32 %v2259_v6, %v2252_v3 }
 0x166   : > { %v784_v57 = vadd.f32 %v783_v49, %v2414_v53  ;;  %3724 = vst [vmem:[#allocation19_spill] sm:$0xff] %v2432_v38  ;;  %v2437_v49 = vadd.f32 %v2259_v6, %v2240_v58  ;;  %v707_v53 = vpop.f32.mrf.mxu2  ;;  %v2452_v58 = vadd.f32 %v2259_v6, %v2266_v9 }
 0x167   : > { %3727 = vst [vmem:[#allocation22_spill] sm:$0xff] %v2447_v55 }
 0x168   : > { %v785_v30 = vadd.f32 %v784_v57, %v2418_v61  ;;  %3725 = vst [vmem:[#allocation20_spill] sm:$0xff] %v2437_v49  ;;  %v2442_v57 = vadd.f32 %v2259_v6, %v2246_v63  ;;  %v2042_v61 = vmov 512.0  }
 0x169   : > { %3728 = vst [vmem:[#allocation23_spill] sm:$0xff] %v2452_v58  ;;  %1903 = vrcp.f32 %v2042_v61 }
 0x16a   : > { %v786_v56 = vadd.f32 %v785_v30, %v2422_v28  ;;  %3726 = vst [vmem:[#allocation21_spill] sm:$0xff] %v2442_v57  ;;  %v740_v30 = vpop.f32.mrf.mxu3 }
 0x16c   : > { %v787_v20 = vadd.f32 %v786_v56, %v2427_v7 }
 0x16e   : > { %v788_v48 = vadd.f32 %v787_v20, %v2432_v38  ;;  %v2457_v38 = vadd.f32 %v2259_v6, %v2293_v23 }
 0x170   : > { %v789_v52 = vadd.f32 %v788_v48, %v2437_v49  ;;  %3729 = vst [vmem:[#allocation24_spill] sm:$0xff] %v2457_v38  ;;  %v2462_v48 = vadd.f32 %v2259_v6, %v2317_v39  ;;  %v710_v49 = vpop.f32.mrf.mxu2 }
 0x172   : > { %v790_v56 = vadd.f32 %v789_v52, %v2442_v57  ;;  %3730 = vst [vmem:[#allocation25_spill] sm:$0xff] %v2462_v48  ;;  %v2467_v52 = vadd.f32 %v2259_v6, %v2338_v5 }
 0x174   : > { %v791_v20 = vadd.f32 %v790_v56, %v2447_v55  ;;  %3731 = vst [vmem:[#allocation26_spill] sm:$0xff] %v2467_v52  ;;  %v742_v56 = vpop.f32.mrf.mxu3  ;;  %v2471_v55 = vadd.f32 %v2259_v6, %v700_v35  ;;  %v711_v35 = vadd.f32 %v2259_v6, %v710_v49 }
 0x176   : > { %v792_v63 = vadd.f32 %v791_v20, %v2452_v58  ;;  %3732 = vst [vmem:[#allocation27_spill] sm:$0xff] %v2471_v55  ;;  %v2475_v20 = vadd.f32 %v2259_v6, %v702_v15 }
 0x178   : > { %v793_v3 = vadd.f32 %v792_v63, %v2457_v38  ;;  %3733 = vst [vmem:[#allocation28_spill] sm:$0xff] %v2475_v20  ;;  %v2480_v38 = vadd.f32 %v2259_v6, %v705_v34  ;;  %v718_v34 = vadd.f32 %v2259_v6, %v2248_v0  ;;  %v731_v0 = vadd.f32 %v2259_v6, %v2345_v16 }
 0x17a   : > { %v794_v9 = vadd.f32 %v793_v3, %v2462_v48  ;;  %3734 = vst [vmem:[#allocation29_spill] sm:$0xff] %v2480_v38  ;;  %v708_v3 = vadd.f32 %v2259_v6, %v707_v53  ;;  %v712_v48 = vpop.f32.mrf.mxu2 }
 0x17b   : > { %v713_v15 = vadd.f32 %v2259_v6, %v712_v48 }
 0x17c   : > { %v795_v23 = vadd.f32 %v794_v9, %v2467_v52  ;;  %v745_v57 = vpop.f32.mrf.mxu3  ;;  %v741_v52 = vadd.f32 %v2259_v6, %v740_v30 }
 0x17e   : > { %v796_v39 = vadd.f32 %v795_v23, %v2471_v55  ;;  %v716_v23 = vadd.f32 %v2259_v6, %v2242_v60  ;;  %v728_v60 = vadd.f32 %v2259_v6, %v2323_v43 }
 0x180   : > { %v797_v63 = vadd.f32 %v796_v39, %v2475_v20 }
 0x182   : > { %v798_v5 = vadd.f32 %v797_v63, %v2480_v38  ;;  %v721_v63 = vadd.f32 %v2259_v6, %v2254_v4  ;;  %v733_v4 = vadd.f32 %v2259_v6, %v2372_v40 }
 0x184   : > { %v799_v58 = vadd.f32 %v798_v5, %v708_v3  ;;  %v723_v5 = vadd.f32 %v2259_v6, %v2274_v12  ;;  %v747_v38 = vpop.f32.mrf.mxu3  ;;  %v736_v12 = vadd.f32 %v2259_v6, %v2398_v26 }
 0x185   : > { %v748_v40 = vadd.f32 %v2259_v6, %v747_v38 }
 0x186   : > { %v800_v9 = vadd.f32 %v799_v58, %v711_v35  ;;  %v726_v58 = vadd.f32 %v2259_v6, %v2299_v27  ;;  %v738_v27 = vadd.f32 %v2259_v6, %v737_v59 }
 0x188   : > { %v801_v55 = vadd.f32 %v800_v9, %v713_v15 }
 0x18a   : > { %v802_v39 = vadd.f32 %v801_v55, %v716_v23 }
 0x18c   : > { %v803_v53 = vadd.f32 %v802_v39, %v718_v34  ;;  %v750_v20 = vpop.f32.mrf.mxu3 }
 0x18e   : > { %v804_v49 = vadd.f32 %v803_v53, %v721_v63 }
 0x190   : > { %v805_v48 = vadd.f32 %v804_v49, %v723_v5 }
 0x192   : > { %v806_v9 = vadd.f32 %v805_v48, %v726_v58  ;;  %v743_v48 = vadd.f32 %v2259_v6, %v742_v56 }
 0x194   : > { %v807_v55 = vadd.f32 %v806_v9, %v728_v60  ;;  %v746_v9 = vadd.f32 %v2259_v6, %v745_v57 }
 0x196   : > { %v808_v39 = vadd.f32 %v807_v55, %v731_v0  ;;  %v752_v55 = vpop.f32.mrf.mxu3 }
 0x198   : > { %v809_v53 = vadd.f32 %v808_v39, %v733_v4  ;;  %v751_v39 = vadd.f32 %v2259_v6, %v750_v20 }
 0x19a   : > { %v810_v49 = vadd.f32 %v809_v53, %v736_v12  ;;  %v753_v53 = vadd.f32 %v2259_v6, %v752_v55 }
 0x19c   : > { %v811_v43 = vadd.f32 %v810_v49, %v738_v27  ;;  %v1904_v49 = vpop.eup %1903 }
 0x19d   : > { %vm829_vm0 = vweird.f32 %v1904_v49 }
 0x19e   : > { %v812_v7 = vadd.f32 %v811_v43, %v741_v52  ;;  %v825_v43 = vmul.f32 512.0, %v1904_v49 }
 0x1a0   : > { %v813_v16 = vadd.f32 %v812_v7, %v743_v48  ;;  %v826_v41 = vsub.f32 1.0, %v825_v43 }
 0x1a2   : > { %v814_v28 = vadd.f32 %v813_v16, %v746_v9  ;;  %v827_v16 = vmul.f32 %v1904_v49, %v826_v41 }
 0x1a4   : > { %v815_v26 = vadd.f32 %v814_v28, %v748_v40  ;;  %v828_v38 = vadd.f32 %v1904_v49, %v827_v16 }
 0x1a6   : > { %v816_v59 = vadd.f32 %v815_v26, %v751_v39  ;;  %v2511_v61 = vsel %vm829_vm0, %v1904_v49, %v828_v38 }
 0x1a8   : > { %v817_v30 = vadd.f32 %v816_v59, %v753_v53 }
 0x1aa   : > { %v818_v45 = vrot.slane %v817_v30, 4 }
 0x1ac   : > { %v819_v56 = vadd.f32 %v818_v45, %v817_v30 }
 0x1ae   : > { %v820_v7 = vrot.slane %v819_v56, 2 }
 0x1b0   : > { %v821_v57 = vadd.f32 %v820_v7, %v819_v56 }
 0x1b2   : > { %v822_v2 = vrot.slane %v821_v57, 1 }
 0x1b4   : > { %v823_v21 = vadd.f32 %v822_v2, %v821_v57 }
 0x1b6   : > { %v2514_v28 = vmul.f32 %v2511_v61, %v823_v21 }
 0x1b8   : > { %v2517_v6 = vsub.f32 %v708_v3, %v2514_v28  ;;  %v2520_v20 = vsub.f32 %v711_v35, %v2514_v28  ;;  %v2523_v45 = vsub.f32 %v713_v15, %v2514_v28  ;;  %v2526_v41 = vsub.f32 %v716_v23, %v2514_v28 }
 0x1b9   : > { %v2529_v55 = vsub.f32 %v718_v34, %v2514_v28  ;;  %v2532_v2 = vsub.f32 %v721_v63, %v2514_v28  ;;  %v2535_v21 = vsub.f32 %v723_v5, %v2514_v28  ;;  %v2538_v3 = vsub.f32 %v726_v58, %v2514_v28 }
 0x1ba   : > { %v2541_v35 = vsub.f32 %v728_v60, %v2514_v28  ;;  %v2544_v15 = vsub.f32 %v731_v0, %v2514_v28  ;;  %v2547_v23 = vsub.f32 %v733_v4, %v2514_v28  ;;  %v2550_v34 = vsub.f32 %v736_v12, %v2514_v28 }
 0x1bb   : > { %v2553_v63 = vsub.f32 %v738_v27, %v2514_v28  ;;  %v2556_v5 = vsub.f32 %v741_v52, %v2514_v28  ;;  %v2559_v58 = vsub.f32 %v743_v48, %v2514_v28  ;;  %v2562_v60 = vsub.f32 %v746_v9, %v2514_v28 }
 0x1bc   : > { %v2565_v0 = vsub.f32 %v748_v40, %v2514_v28  ;;  %v2568_v4 = vsub.f32 %v751_v39, %v2514_v28  ;;  %v2571_v12 = vsub.f32 %v753_v53, %v2514_v28  ;;  %v2575_v27 = vsub.f32 %v2269_v10, %v2514_v28 }
 0x1bd   : > { %3735 = vst [vmem:[#allocation30_spill] sm:$0xff] %v2553_v63  ;;  %v2579_v52 = vsub.f32 %v2264_v8, %v2514_v28  ;;  %v2583_v48 = vsub.f32 %v2272_v11, %v2514_v28  ;;  %v2591_v26 = vsub.f32 %v2279_v14, %v2514_v28  ;;  %v2595_v10 = vsub.f32 %v2283_v17, %v2514_v28 }
 0x1be   : > { %3736 = vst [vmem:[#allocation31_spill] sm:$0xff] %v2556_v5  ;;  %v896_v9 = vmul.f32 %v2575_v27, %v2575_v27  ;;  %v2601_v11 = vsub.f32 %v2287_v19, %v2514_v28  ;;  %v2607_v14 = vsub.f32 %v2291_v22, %v2514_v28  ;;  %v2613_v49 = vsub.f32 %v2297_v25, %v2514_v28 }
 0x1bf   : > { %3737 = vst [vmem:[#allocation32_spill] sm:$0xff] %v2559_v58  ;;  %v897_v40 = vmul.f32 %v2579_v52, %v2579_v52  ;;  %v898_v8 = vmul.f32 %v2583_v48, %v2583_v48  ;;  %v899_v59 = vmul.f32 %v2591_v26, %v2591_v26  ;;  %v900_v17 = vmul.f32 %v2595_v10, %v2595_v10 }
 0x1c0   : > { %3738 = vst [vmem:[#allocation33_spill] sm:$0xff] %v2562_v60  ;;  %v901_v19 = vmul.f32 %v2601_v11, %v2601_v11  ;;  %v2619_v43 = vsub.f32 %v2303_v29, %v2514_v28  ;;  %v902_v22 = vmul.f32 %v2607_v14, %v2607_v14  ;;  %v2625_v57 = vsub.f32 %v2307_v31, %v2514_v28 }
 0x1c1   : > { %3739 = vst [vmem:[#allocation34_spill] sm:$0xff] %v2565_v0  ;;  %v960_v39 = vadd.f32 %v897_v40, %v896_v9  ;;  %v903_v25 = vmul.f32 %v2613_v49, %v2613_v49  ;;  %v2631_v38 = vsub.f32 %v2311_v33, %v2514_v28  ;;  %v2637_v40 = vsub.f32 %v2315_v36, %v2514_v28 }
 0x1c2   : > { %3740 = vst [vmem:[#allocation35_spill] sm:$0xff] %v2568_v4  ;;  %v904_v29 = vmul.f32 %v2619_v43, %v2619_v43  ;;  %v905_v31 = vmul.f32 %v2625_v57, %v2625_v57 }
 0x1c3   : > { %3741 = vst [vmem:[#allocation36_spill] sm:$0xff] %v2575_v27  ;;  %v961_v53 = vadd.f32 %v960_v39, %v898_v8  ;;  %v2643_v39 = vsub.f32 %v2321_v42, %v2514_v28  ;;  %v906_v33 = vmul.f32 %v2631_v38, %v2631_v38  ;;  %v907_v36 = vmul.f32 %v2637_v40, %v2637_v40 }
 0x1c5   : > { %v962_v30 = vadd.f32 %v961_v53, %v899_v59  ;;  %v2649_v53 = vsub.f32 %v2327_v47, %v2514_v28  ;;  %v908_v42 = vmul.f32 %v2643_v39, %v2643_v39 }
 0x1c7   : > { %v963_v56 = vadd.f32 %v962_v30, %v900_v17  ;;  %v2655_v30 = vsub.f32 %v2331_v50, %v2514_v28  ;;  %v909_v47 = vmul.f32 %v2649_v53, %v2649_v53 }
 0x1c9   : > { %v964_v7 = vadd.f32 %v963_v56, %v901_v19  ;;  %v2661_v56 = vsub.f32 %v2336_v1, %v2514_v28  ;;  %v910_v50 = vmul.f32 %v2655_v30, %v2655_v30 }
 0x1cb   : > { %v965_v16 = vadd.f32 %v964_v7, %v902_v22  ;;  %v2667_v7 = vsub.f32 %v2342_v13, %v2514_v28  ;;  %v911_v1 = vmul.f32 %v2661_v56, %v2661_v56 }
 0x1cd   : > { %v966_v9 = vadd.f32 %v965_v16, %v903_v25  ;;  %v2673_v16 = vsub.f32 %v2349_v18, %v2514_v28  ;;  %v912_v13 = vmul.f32 %v2667_v7, %v2667_v7 }
 0x1cf   : > { %v967_v8 = vadd.f32 %v966_v9, %v904_v29  ;;  %v2679_v9 = vsub.f32 %v2354_v24, %v2514_v28  ;;  %v913_v18 = vmul.f32 %v2673_v16, %v2673_v16 }
 0x1d1   : > { %v968_v59 = vadd.f32 %v967_v8, %v905_v31  ;;  %v2685_v8 = vsub.f32 %v2359_v37, %v2514_v28  ;;  %v914_v24 = vmul.f32 %v2679_v9, %v2679_v9 }
 0x1d3   : > { %v969_v17 = vadd.f32 %v968_v59, %v906_v33  ;;  %v2691_v59 = vsub.f32 %v2364_v32, %v2514_v28  ;;  %v915_v37 = vmul.f32 %v2685_v8, %v2685_v8 }
 0x1d5   : > { %v970_v19 = vadd.f32 %v969_v17, %v907_v36  ;;  %v2697_v17 = vsub.f32 %v2369_v44, %v2514_v28  ;;  %v916_v32 = vmul.f32 %v2691_v59, %v2691_v59 }
 0x1d7   : > { %v971_v22 = vadd.f32 %v970_v19, %v908_v42  ;;  %v2703_v19 = vsub.f32 %v2376_v46, %v2514_v28  ;;  %v917_v44 = vmul.f32 %v2697_v17, %v2697_v17 }
 0x1d9   : > { %v972_v25 = vadd.f32 %v971_v22, %v909_v47  ;;  %v2709_v22 = vsub.f32 %v2381_v51, %v2514_v28  ;;  %v918_v46 = vmul.f32 %v2703_v19, %v2703_v19 }
 0x1db   : > { %v973_v29 = vadd.f32 %v972_v25, %v910_v50  ;;  %v2715_v25 = vsub.f32 %v2386_v54, %v2514_v28  ;;  %v919_v51 = vmul.f32 %v2709_v22, %v2709_v22 }
 0x1dd   : > { %v974_v31 = vadd.f32 %v973_v29, %v911_v1  ;;  %v2721_v29 = vsub.f32 %v2391_v62, %v2514_v28  ;;  %v920_v54 = vmul.f32 %v2715_v25, %v2715_v25 }
 0x1df   : > { %v975_v33 = vadd.f32 %v974_v31, %v912_v13  ;;  %v3742_v31 = vld [vmem:[#allocation11_spill] sm:$0xff]  ;;  %v921_v62 = vmul.f32 %v2721_v29, %v2721_v29 }
 0x1e1   : > { %v976_v36 = vadd.f32 %v975_v33, %v913_v18  ;;  %v2727_v18 = vsub.f32 %v3742_v31, %v2514_v28 }
 0x1e3   : > { %v977_v42 = vadd.f32 %v976_v36, %v914_v24  ;;  %v3743_v24 = vld [vmem:[#allocation12_spill] sm:$0xff] }
 0x1e4   : > { %v2733_v36 = vsub.f32 %v3743_v24, %v2514_v28  ;;  %v3750_v24 = vld [vmem:[#allocation16_spill] sm:$0xff] }
 0x1e5   : > { %v978_v47 = vadd.f32 %v977_v42, %v915_v37  ;;  %v3744_v42 = vld [vmem:[#allocation13_spill] sm:$0xff] }
 0x1e7   : > { %v979_v50 = vadd.f32 %v978_v47, %v916_v32  ;;  %v2739_v32 = vsub.f32 %v3744_v42, %v2514_v28  ;;  %v922_v47 = vmul.f32 %v2727_v18, %v2727_v18  ;;  %v2757_v42 = vsub.f32 %v3750_v24, %v2514_v28  ;;  %v3756_v24 = vld [vmem:[#allocation19_spill] sm:$0xff] }
 0x1e9   : > { %v980_v1 = vadd.f32 %v979_v50, %v917_v44  ;;  %3745 = vst [vmem:[#allocation11_spill] sm:$0xff] %v2739_v32  ;;  %v3746_v50 = vld [vmem:[#allocation14_spill] sm:$0xff] }
 0x1ea   : > { %3751 = vst [vmem:[#allocation14_spill] sm:$0xff] %v2757_v42 }
 0x1eb   : > { %v981_v13 = vadd.f32 %v980_v1, %v918_v46  ;;  %v2745_v46 = vsub.f32 %v3746_v50, %v2514_v28  ;;  %v923_v1 = vmul.f32 %v2733_v36, %v2733_v36  ;;  %v3752_v50 = vld [vmem:[#allocation17_spill] sm:$0xff] }
 0x1ec   : > { %v2763_v27 = vsub.f32 %v3752_v50, %v2514_v28  ;;  %v3758_v50 = vld [vmem:[#allocation20_spill] sm:$0xff] }
 0x1ed   : > { %v982_v33 = vadd.f32 %v981_v13, %v919_v51  ;;  %3747 = vst [vmem:[#allocation12_spill] sm:$0xff] %v2745_v46  ;;  %v3748_v13 = vld [vmem:[#allocation15_spill] sm:$0xff] }
 0x1ee   : > { %v2751_v31 = vsub.f32 %v3748_v13, %v2514_v28  ;;  %3753 = vst [vmem:[#allocation15_spill] sm:$0xff] %v2763_v27  ;;  %v3754_v13 = vld [vmem:[#allocation18_spill] sm:$0xff] }
 0x1ef   : > { %v983_v37 = vadd.f32 %v982_v33, %v920_v54  ;;  %v924_v54 = vmul.f32 %v2739_v32, %v2739_v32  ;;  %v2769_v32 = vsub.f32 %v3754_v13, %v2514_v28  ;;  %v3760_v13 = vld [vmem:[#allocation21_spill] sm:$0xff] }
 0x1f0   : > { %3749 = vst [vmem:[#allocation13_spill] sm:$0xff] %v2751_v31 }
 0x1f1   : > { %v984_v44 = vadd.f32 %v983_v37, %v921_v62  ;;  %v925_v62 = vmul.f32 %v2745_v46, %v2745_v46  ;;  %3755 = vst [vmem:[#allocation16_spill] sm:$0xff] %v2769_v32  ;;  %v2775_v46 = vsub.f32 %v3756_v24, %v2514_v28  ;;  %v3762_v24 = vld [vmem:[#allocation22_spill] sm:$0xff] }
 0x1f3   : > { %v985_v51 = vadd.f32 %v984_v44, %v922_v47  ;;  %v926_v47 = vmul.f32 %v2751_v31, %v2751_v31  ;;  %3757 = vst [vmem:[#allocation17_spill] sm:$0xff] %v2775_v46  ;;  %v2781_v31 = vsub.f32 %v3758_v50, %v2514_v28  ;;  %v3764_v50 = vld [vmem:[#allocation23_spill] sm:$0xff] }
 0x1f5   : > { %v986_v33 = vadd.f32 %v985_v51, %v923_v1  ;;  %v927_v1 = vmul.f32 %v2757_v42, %v2757_v42  ;;  %3759 = vst [vmem:[#allocation18_spill] sm:$0xff] %v2781_v31  ;;  %v2787_v42 = vsub.f32 %v3760_v13, %v2514_v28  ;;  %v3766_v13 = vld [vmem:[#allocation24_spill] sm:$0xff] }
 0x1f7   : > { %v987_v37 = vadd.f32 %v986_v33, %v924_v54  ;;  %v928_v54 = vmul.f32 %v2763_v27, %v2763_v27  ;;  %3761 = vst [vmem:[#allocation19_spill] sm:$0xff] %v2787_v42  ;;  %v2793_v27 = vsub.f32 %v3762_v24, %v2514_v28  ;;  %v3768_v24 = vld [vmem:[#allocation25_spill] sm:$0xff] }
 0x1f9   : > { %v988_v44 = vadd.f32 %v987_v37, %v925_v62  ;;  %v929_v62 = vmul.f32 %v2769_v32, %v2769_v32  ;;  %3763 = vst [vmem:[#allocation20_spill] sm:$0xff] %v2793_v27  ;;  %v2799_v32 = vsub.f32 %v3764_v50, %v2514_v28  ;;  %v3769_v50 = vld [vmem:[#allocation26_spill] sm:$0xff] }
 0x1fb   : > { %v989_v51 = vadd.f32 %v988_v44, %v926_v47  ;;  %v930_v47 = vmul.f32 %v2775_v46, %v2775_v46  ;;  %3765 = vst [vmem:[#allocation21_spill] sm:$0xff] %v2799_v32  ;;  %v2805_v46 = vsub.f32 %v3766_v13, %v2514_v28  ;;  %v3771_v13 = vld [vmem:[#allocation27_spill] sm:$0xff] }
 0x1fd   : > { %v990_v33 = vadd.f32 %v989_v51, %v927_v1  ;;  %v931_v1 = vmul.f32 %v2781_v31, %v2781_v31  ;;  %3767 = vst [vmem:[#allocation22_spill] sm:$0xff] %v2805_v46  ;;  %v2811_v31 = vsub.f32 %v3768_v24, %v2514_v28  ;;  %v3772_v24 = vld [vmem:[#allocation28_spill] sm:$0xff] }
 0x1ff   : > { %v991_v37 = vadd.f32 %v990_v33, %v928_v54  ;;  %v932_v54 = vmul.f32 %v2787_v42, %v2787_v42  ;;  %v2817_v42 = vsub.f32 %v3769_v50, %v2514_v28  ;;  %v3773_v50 = vld [vmem:[#allocation29_spill] sm:$0xff] }
 0x201   : > { %v992_v44 = vadd.f32 %v991_v37, %v929_v62  ;;  %v933_v62 = vmul.f32 %v2793_v27, %v2793_v27  ;;  %3770 = vst [vmem:[#allocation23_spill] sm:$0xff] %v2817_v42  ;;  %v2823_v27 = vsub.f32 %v3771_v13, %v2514_v28 }
 0x203   : > { %v993_v51 = vadd.f32 %v992_v44, %v930_v47  ;;  %v934_v47 = vmul.f32 %v2799_v32, %v2799_v32  ;;  %v2829_v32 = vsub.f32 %v3772_v24, %v2514_v28 }
 0x205   : > { %v994_v33 = vadd.f32 %v993_v51, %v931_v1  ;;  %v935_v1 = vmul.f32 %v2805_v46, %v2805_v46  ;;  %v2835_v46 = vsub.f32 %v3773_v50, %v2514_v28  ;;  %v939_v13 = vmul.f32 %v2829_v32, %v2829_v32 }
 0x206   : > { %v942_v28 = vmul.f32 %v2520_v20, %v2520_v20  ;;  %v943_v50 = vmul.f32 %v2523_v45, %v2523_v45 }
 0x207   : > { %v995_v37 = vadd.f32 %v994_v33, %v932_v54  ;;  %v936_v54 = vmul.f32 %v2811_v31, %v2811_v31 }
 0x209   : > { %v996_v44 = vadd.f32 %v995_v37, %v933_v62  ;;  %v937_v62 = vmul.f32 %v2817_v42, %v2817_v42  ;;  %v941_v42 = vmul.f32 %v2517_v6, %v2517_v6 }
 0x20b   : > { %v997_v51 = vadd.f32 %v996_v44, %v934_v47  ;;  %v938_v47 = vmul.f32 %v2823_v27, %v2823_v27 }
 0x20d   : > { %v998_v33 = vadd.f32 %v997_v51, %v935_v1  ;;  %v940_v51 = vmul.f32 %v2835_v46, %v2835_v46 }
 0x20f   : > { %v999_v37 = vadd.f32 %v998_v33, %v936_v54 }
 0x211   : > { %v1000_v44 = vadd.f32 %v999_v37, %v937_v62  ;;  %v944_v37 = vmul.f32 %v2526_v41, %v2526_v41 }
 0x213   : > { %v1001_v1 = vadd.f32 %v1000_v44, %v938_v47  ;;  %v945_v44 = vmul.f32 %v2529_v55, %v2529_v55 }
 0x215   : > { %v1002_v24 = vadd.f32 %v1001_v1, %v939_v13  ;;  %v946_v1 = vmul.f32 %v2532_v2, %v2532_v2 }
 0x217   : > { %v1003_v54 = vadd.f32 %v1002_v24, %v940_v51  ;;  %v947_v24 = vmul.f32 %v2535_v21, %v2535_v21 }
 0x219   : > { %v1004_v33 = vadd.f32 %v1003_v54, %v941_v42  ;;  %v948_v54 = vmul.f32 %v2538_v3, %v2538_v3 }
 0x21b   : > { %v1005_v62 = vadd.f32 %v1004_v33, %v942_v28  ;;  %v949_v33 = vmul.f32 %v2541_v35, %v2541_v35 }
 0x21d   : > { %v1006_v47 = vadd.f32 %v1005_v62, %v943_v50  ;;  %v950_v62 = vmul.f32 %v2544_v15, %v2544_v15 }
 0x21f   : > { %v1007_v13 = vadd.f32 %v1006_v47, %v944_v37  ;;  %v951_v47 = vmul.f32 %v2547_v23, %v2547_v23 }
 0x221   : > { %v1008_v51 = vadd.f32 %v1007_v13, %v945_v44  ;;  %v952_v13 = vmul.f32 %v2550_v34, %v2550_v34 }
 0x223   : > { %v1009_v42 = vadd.f32 %v1008_v51, %v946_v1  ;;  %v953_v51 = vmul.f32 %v2553_v63, %v2553_v63 }
 0x225   : > { %v1010_v28 = vadd.f32 %v1009_v42, %v947_v24  ;;  %v954_v42 = vmul.f32 %v2556_v5, %v2556_v5 }
 0x227   : > { %v1011_v50 = vadd.f32 %v1010_v28, %v948_v54  ;;  %v955_v28 = vmul.f32 %v2559_v58, %v2559_v58 }
 0x229   : > { %v1012_v37 = vadd.f32 %v1011_v50, %v949_v33  ;;  %v956_v50 = vmul.f32 %v2562_v60, %v2562_v60 }
 0x22b   : > { %v1013_v44 = vadd.f32 %v1012_v37, %v950_v62  ;;  %v957_v37 = vmul.f32 %v2565_v0, %v2565_v0 }
 0x22d   : > { %v1014_v1 = vadd.f32 %v1013_v44, %v951_v47  ;;  %v958_v44 = vmul.f32 %v2568_v4, %v2568_v4 }
 0x22f   : > { %v1015_v24 = vadd.f32 %v1014_v1, %v952_v13  ;;  %v959_v1 = vmul.f32 %v2571_v12, %v2571_v12 }
 0x231   : > { %v1016_v54 = vadd.f32 %v1015_v24, %v953_v51 }
 0x233   : > { %v1017_v33 = vadd.f32 %v1016_v54, %v954_v42 }
 0x235   : > { %v1018_v62 = vadd.f32 %v1017_v33, %v955_v28 }
 0x237   : > { %v1019_v47 = vadd.f32 %v1018_v62, %v956_v50 }
 0x239   : > { %v1020_v13 = vadd.f32 %v1019_v47, %v957_v37 }
 0x23b   : > { %v1021_v51 = vadd.f32 %v1020_v13, %v958_v44 }
 0x23d   : > { %v1022_v24 = vadd.f32 %v1021_v51, %v959_v1 }
 0x23f   : > { %v1023_v5 = vrot.slane %v1022_v24, 4 }
 0x241   : > { %v1024_v58 = vadd.f32 %v1023_v5, %v1022_v24  ;;  %v2885_v5 = vld [vmem:[%s3648_s3] ss:$0 sm:$0xff] }
 0x242   : > { %3774 = vst [vmem:[#allocation24_spill] sm:$0xff] %v2885_v5 }
 0x243   : > { %v1025_v42 = vrot.slane %v1024_v58, 2 }
 0x245   : > { %v1026_v54 = vadd.f32 %v1025_v42, %v1024_v58  ;;  %v3783_v42 = vld [vmem:[#allocation11_spill] sm:$0xff] }
 0x247   : > { %v1027_v63 = vrot.slane %v1026_v54, 1 }
 0x249   : > { %v1028_v60 = vadd.f32 %v1027_v63, %v1026_v54  ;;  %v3786_v54 = vld [vmem:[#allocation13_spill] sm:$0xff] }
 0x24b   : > { %v1029_v28 = vmul.f32 %v1028_v60, %v2511_v61  ;;  %v2892_v61 = vld [vmem:[%s3649_s4] ss:$0 sm:$0xff] }
 0x24c   : > { %3776 = vst [vmem:[#allocation26_spill] sm:$0xff] %v2892_v61 }
 0x24d   : > { %v1030_v33 = vadd.f32 1e-05, %v1029_v28 }
 0x24f   : > { %1905 = vrsqrt.f32 %v1030_v33  ;;  %vm1037_vm2 = vweird.f32 %v1030_v33 }
 0x255   : > { %v1906_v50 = vpop.eup %1905 }
 0x256   : > { %v1032_v62 = vmul.f32 %v1906_v50, %v1030_v33  ;;  %vm1038_vm1 = vweird.f32 %v1906_v50 }
 0x257   : > { %vm1039_vm3 = vmor %vm1037_vm2, %vm1038_vm1 }
 0x258   : > { %v1033_v0 = vmul.f32 %v1906_v50, %v1032_v62  ;;  %v3789_v62 = vld [vmem:[#allocation16_spill] sm:$0xff] }
 0x25a   : > { %v1034_v4 = vmul.f32 0.5, %v1033_v0 }
 0x25c   : > { %v1035_v37 = vsub.f32 1.5, %v1034_v4 }
 0x25e   : > { %v1036_v47 = vmul.f32 %v1906_v50, %v1035_v37 }
 0x260   : > { %v2887_v63 = vsel %vm1039_vm3, %v1906_v50, %v1036_v47  ;;  %v3788_v50 = vld [vmem:[#allocation15_spill] sm:$0xff]  ;;  %v3790_v47 = vld [vmem:[#allocation17_spill] sm:$0xff] }
 0x261   : > { %3775 = vst [vmem:[#allocation25_spill] sm:$0xff] %v2887_v63  ;;  %v1104_v58 = vmul.f32 %v2887_v63, %v2571_v12  ;;  %v2898_v60 = vmul.f32 %v2887_v63, %v2579_v52  ;;  %v2902_v0 = vmul.f32 %v2887_v63, %v2583_v48  ;;  %v2906_v4 = vmul.f32 %v2887_v63, %v2591_v26 }
 0x262   : > { %v2910_v44 = vmul.f32 %v2887_v63, %v2595_v10  ;;  %v2914_v13 = vmul.f32 %v2887_v63, %v2601_v11  ;;  %v2919_v52 = vmul.f32 %v2887_v63, %v2607_v14  ;;  %v2923_v48 = vmul.f32 %v2887_v63, %v2613_v49 }
 0x263   : > { %v1172_v12 = vmul.f32 %v2885_v5, %v1104_v58  ;;  %v2927_v26 = vmul.f32 %v2887_v63, %v2619_v43  ;;  %v2932_v10 = vmul.f32 %v2887_v63, %v2625_v57  ;;  %v2936_v11 = vmul.f32 %v2887_v63, %v2631_v38 }
 0x264   : > { %v2940_v14 = vmul.f32 %v2887_v63, %v2637_v40  ;;  %v2944_v49 = vmul.f32 %v2887_v63, %v2643_v39  ;;  %v2949_v1 = vmul.f32 %v2887_v63, %v2649_v53  ;;  %v2953_v57 = vmul.f32 %v2887_v63, %v2655_v30 }
 0x265   : > { %v1240_v43 = vadd.f32 %v2892_v61, %v1172_v12  ;;  %v2957_v38 = vmul.f32 %v2887_v63, %v2661_v56  ;;  %v2961_v40 = vmul.f32 %v2887_v63, %v2667_v7  ;;  %v2965_v39 = vmul.f32 %v2887_v63, %v2673_v16  ;;  %v3791_v12 = vld [vmem:[#allocation18_spill] sm:$0xff] }
 0x266   : > { %v2969_v53 = vmul.f32 %v2887_v63, %v2679_v9  ;;  %v2973_v30 = vmul.f32 %v2887_v63, %v2685_v8  ;;  %v2977_v56 = vmul.f32 %v2887_v63, %v2691_v59  ;;  %v2981_v7 = vmul.f32 %v2887_v63, %v2697_v17  ;;  %v3795_v61 = vld [vmem:[#allocation22_spill] sm:$0xff] }
 0x267   : > { %vm1304_vm4 = vcmp.gt.f32.partialorder %v1240_v43, 0.0  ;;  %v1368_v51 = vmul.f32 0.01, %v1240_v43  ;;  %v2985_v16 = vmul.f32 %v2887_v63, %v2703_v19  ;;  %v2989_v9 = vmul.f32 %v2887_v63, %v2709_v22 }
 0x268   : > { %v2993_v8 = vmul.f32 %v2887_v63, %v2715_v25  ;;  %v2997_v59 = vmul.f32 %v2887_v63, %v2721_v29  ;;  %v3001_v17 = vmul.f32 %v2887_v63, %v2727_v18  ;;  %v3005_v19 = vmul.f32 %v2887_v63, %v2733_v36  ;;  %v3785_v25 = vld [vmem:[#allocation12_spill] sm:$0xff]  ;;  %v3787_v18 = vld [vmem:[#allocation14_spill] sm:$0xff] }
 0x269   : > { %3777 = vst [vmem:[#allocation27_spill] sm:$0xff] %v2985_v16  ;;  %v1432_v24 = vsel %vm1304_vm4, %v1240_v43, %v1368_v51  ;;  %v3009_v22 = vmul.f32 %v2887_v63, %v3783_v42  ;;  %v1070_v29 = vmul.f32 %v2887_v63, %v3785_v25  ;;  %v1071_v28 = vmul.f32 %v2887_v63, %v3786_v54  ;;  %v3792_v51 = vld [vmem:[#allocation19_spill] sm:$0xff]  ;;  %v3793_v42 = vld [vmem:[#allocation20_spill] sm:$0xff]  ;;  %v3794_v54 = vld [vmem:[#allocation21_spill] sm:$0xff] }
 0x26a   : > { %3778 = vst [vmem:[#allocation28_spill] sm:$0xff] %v2989_v9  ;;  %v1072_v33 = vmul.f32 %v2887_v63, %v3787_v18  ;;  %v1073_v36 = vmul.f32 %v2887_v63, %v3788_v50  ;;  %v1074_v37 = vmul.f32 %v2887_v63, %v3789_v62  ;;  %v1075_v58 = vmul.f32 %v2887_v63, %v3790_v47  ;;  %v3801_v9 = vld [vmem:[#allocation34_spill] sm:$0xff]  ;;  %v3802_v16 = vld [vmem:[#allocation35_spill] sm:$0xff] }
 0x26b   : > { %3779 = vst [vmem:[#allocation29_spill] sm:$0xff] %v2993_v8  ;;  %v1076_v43 = vmul.f32 %v2887_v63, %v3791_v12  ;;  %v1078_v25 = vmul.f32 %v2887_v63, %v3793_v42  ;;  %v1079_v18 = vmul.f32 %v2887_v63, %v3794_v54  ;;  %v1080_v50 = vmul.f32 %v2887_v63, %v3795_v61  ;;  %v3800_v8 = vld [vmem:[#allocation33_spill] sm:$0xff] }
 0x26c   : > { %3780 = vst [vmem:[#allocation37_spill] sm:$0xff] %v2997_v59  ;;  %v1081_v62 = vmul.f32 %v2887_v63, %v2811_v31  ;;  %v1083_v12 = vmul.f32 %v2887_v63, %v2823_v27  ;;  %v1085_v42 = vmul.f32 %v2887_v63, %v2835_v46  ;;  %v1086_v54 = vmul.f32 %v2887_v63, %v2517_v6  ;;  %v3799_v59 = vld [vmem:[#allocation32_spill] sm:$0xff] }
 0x26d   : > { %3781 = vst [vmem:[#allocation38_spill] sm:$0xff] %v3001_v17  ;;  %v1087_v61 = vmul.f32 %v2887_v63, %v2520_v20  ;;  %v1088_v31 = vmul.f32 %v2887_v63, %v2523_v45  ;;  %v1090_v27 = vmul.f32 %v2887_v63, %v2529_v55  ;;  %v1092_v46 = vmul.f32 %v2887_v63, %v2535_v21  ;;  %v3798_v17 = vld [vmem:[#allocation31_spill] sm:$0xff] }
 0x26e   : > { %3782 = vst [vmem:[#allocation39_spill] sm:$0xff] %v3005_v19  ;;  %v1093_v6 = vmul.f32 %v2887_v63, %v2538_v3  ;;  %v1094_v20 = vmul.f32 %v2887_v63, %v2541_v35  ;;  %v1095_v45 = vmul.f32 %v2887_v63, %v2544_v15  ;;  %v1097_v55 = vmul.f32 %v2887_v63, %v2550_v34  ;;  %v3797_v19 = vld [vmem:[#allocation30_spill] sm:$0xff] }
 0x26f   : > { %3784 = vst [vmem:[#allocation11_spill] sm:$0xff] %v3009_v22  ;;  %v3796_v22 = vld [vmem:[#allocation23_spill] sm:$0xff]  ;;  %v1099_v21 = vmul.f32 %v2887_v63, %v3798_v17  ;;  %v1100_v3 = vmul.f32 %v2887_v63, %v3799_v59  ;;  %v1101_v35 = vmul.f32 %v2887_v63, %v3800_v8  ;;  %v1102_v15 = vmul.f32 %v2887_v63, %v3801_v9 }
 0x270   : > { %1496 = vst [vmem:[%s3011_s17 + $0x1f8] sm:$0xff] %v1432_v24  ;;  %v1077_v24 = vmul.f32 %v2887_v63, %v3792_v51  ;;  %v1082_v47 = vmul.f32 %v2887_v63, %v3796_v22  ;;  %v1084_v51 = vmul.f32 %v2887_v63, %v2829_v32  ;;  %v1089_v22 = vmul.f32 %v2887_v63, %v2526_v41 }
 0x271   : > { %v1091_v32 = vmul.f32 %v2887_v63, %v2532_v2  ;;  %v1096_v41 = vmul.f32 %v2887_v63, %v2547_v23  ;;  %v1098_v2 = vmul.f32 %v2887_v63, %v3797_v19  ;;  %v1103_v23 = vmul.f32 %v2887_v63, %v3802_v16  ;;  %v3803_v63 = vld [vmem:[#allocation27_spill] sm:$0xff] }
 0x272   : > { %v1110_v34 = vmul.f32 %v2885_v5, %v2898_v60  ;;  %v1111_v19 = vmul.f32 %v2885_v5, %v2902_v0  ;;  %v1112_v17 = vmul.f32 %v2885_v5, %v2906_v4  ;;  %v1113_v59 = vmul.f32 %v2885_v5, %v2910_v44 }
 0x273   : > { %v1114_v8 = vmul.f32 %v2885_v5, %v2914_v13  ;;  %v1115_v9 = vmul.f32 %v2885_v5, %v2919_v52  ;;  %v1116_v16 = vmul.f32 %v2885_v5, %v2923_v48  ;;  %v1117_v60 = vmul.f32 %v2885_v5, %v2927_v26 }
 0x274   : > { %v1118_v0 = vmul.f32 %v2885_v5, %v2932_v10  ;;  %v1119_v4 = vmul.f32 %v2885_v5, %v2936_v11  ;;  %v1120_v44 = vmul.f32 %v2885_v5, %v2940_v14  ;;  %v1121_v13 = vmul.f32 %v2885_v5, %v2944_v49 }
 0x275   : > { %v1122_v52 = vmul.f32 %v2885_v5, %v2949_v1  ;;  %v1123_v48 = vmul.f32 %v2885_v5, %v2953_v57  ;;  %v1124_v26 = vmul.f32 %v2885_v5, %v2957_v38  ;;  %v1125_v10 = vmul.f32 %v2885_v5, %v2961_v40  ;;  %v3804_v40 = vld [vmem:[#allocation28_spill] sm:$0xff] }
 0x276   : > { %v1126_v11 = vmul.f32 %v2885_v5, %v2965_v39  ;;  %v1127_v14 = vmul.f32 %v2885_v5, %v2969_v53  ;;  %v1128_v49 = vmul.f32 %v2885_v5, %v2973_v30  ;;  %v1129_v1 = vmul.f32 %v2885_v5, %v2977_v56  ;;  %v3805_v53 = vld [vmem:[#allocation29_spill] sm:$0xff] }
 0x277   : > { %v1130_v57 = vmul.f32 %v2885_v5, %v2981_v7  ;;  %v1131_v38 = vmul.f32 %v2885_v5, %v3803_v63  ;;  %v1132_v39 = vmul.f32 %v2885_v5, %v3804_v40  ;;  %v1133_v30 = vmul.f32 %v2885_v5, %v3805_v53  ;;  %v3806_v56 = vld [vmem:[#allocation37_spill] sm:$0xff]  ;;  %v3807_v63 = vld [vmem:[#allocation38_spill] sm:$0xff]  ;;  %v3808_v53 = vld [vmem:[#allocation39_spill] sm:$0xff] }
 0x278   : > { %v1134_v7 = vmul.f32 %v2885_v5, %v3806_v56  ;;  %v1135_v40 = vmul.f32 %v2885_v5, %v3807_v63  ;;  %v1136_v56 = vmul.f32 %v2885_v5, %v3808_v53  ;;  %v3809_v63 = vld [vmem:[#allocation11_spill] sm:$0xff] }
 0x279   : > { %v1137_v53 = vmul.f32 %v2885_v5, %v3809_v63  ;;  %v1138_v63 = vmul.f32 %v2885_v5, %v1070_v29  ;;  %v1139_v29 = vmul.f32 %v2885_v5, %v1071_v28  ;;  %v1140_v28 = vmul.f32 %v2885_v5, %v1072_v33 }
 0x27a   : > { %v1141_v33 = vmul.f32 %v2885_v5, %v1073_v36  ;;  %v1142_v36 = vmul.f32 %v2885_v5, %v1074_v37  ;;  %v1143_v37 = vmul.f32 %v2885_v5, %v1075_v58  ;;  %v1144_v58 = vmul.f32 %v2885_v5, %v1076_v43 }
 0x27b   : > { %v1145_v43 = vmul.f32 %v2885_v5, %v1077_v24  ;;  %v1146_v24 = vmul.f32 %v2885_v5, %v1078_v25  ;;  %v1147_v25 = vmul.f32 %v2885_v5, %v1079_v18  ;;  %v1148_v18 = vmul.f32 %v2885_v5, %v1080_v50 }
 0x27c   : > { %v1149_v50 = vmul.f32 %v2885_v5, %v1081_v62  ;;  %v1150_v62 = vmul.f32 %v2885_v5, %v1082_v47  ;;  %v1151_v47 = vmul.f32 %v2885_v5, %v1083_v12  ;;  %v1152_v12 = vmul.f32 %v2885_v5, %v1084_v51 }
 0x27d   : > { %v1153_v51 = vmul.f32 %v2885_v5, %v1085_v42  ;;  %v1154_v42 = vmul.f32 %v2885_v5, %v1086_v54  ;;  %v1155_v54 = vmul.f32 %v2885_v5, %v1087_v61  ;;  %v1156_v61 = vmul.f32 %v2885_v5, %v1088_v31 }
 0x27e   : > { %v1157_v31 = vmul.f32 %v2885_v5, %v1089_v22  ;;  %v1158_v22 = vmul.f32 %v2885_v5, %v1090_v27  ;;  %v1159_v27 = vmul.f32 %v2885_v5, %v1091_v32  ;;  %v1160_v32 = vmul.f32 %v2885_v5, %v1092_v46 }
 0x27f   : > { %v1161_v46 = vmul.f32 %v2885_v5, %v1093_v6  ;;  %v1162_v6 = vmul.f32 %v2885_v5, %v1094_v20  ;;  %v1163_v20 = vmul.f32 %v2885_v5, %v1095_v45  ;;  %v1164_v45 = vmul.f32 %v2885_v5, %v1096_v41 }
 0x280   : > { %v1165_v41 = vmul.f32 %v2885_v5, %v1097_v55  ;;  %v1166_v55 = vmul.f32 %v2885_v5, %v1098_v2  ;;  %v1167_v2 = vmul.f32 %v2885_v5, %v1099_v21  ;;  %v1168_v21 = vmul.f32 %v2885_v5, %v1100_v3 }
 0x281   : > { %v1169_v3 = vmul.f32 %v2885_v5, %v1101_v35  ;;  %v1170_v35 = vmul.f32 %v2885_v5, %v1102_v15  ;;  %v1171_v15 = vmul.f32 %v2885_v5, %v1103_v23  ;;  %v3810_v5 = vld [vmem:[#allocation26_spill] sm:$0xff] }
 0x282   : > { %v3173_v23 = vadd.f32 %v3810_v5, %v1110_v34  ;;  %v3176_v34 = vadd.f32 %v3810_v5, %v1111_v19  ;;  %v3182_v19 = vadd.f32 %v3810_v5, %v1113_v59  ;;  %v3194_v59 = vadd.f32 %v3810_v5, %v1117_v60 }
 0x283   : > { %v3215_v60 = vadd.f32 %v3810_v5, %v1124_v26  ;;  %v3236_v26 = vadd.f32 %v3810_v5, %v1131_v38  ;;  %v3257_v38 = vadd.f32 %v3810_v5, %v1138_v63  ;;  %v3278_v63 = vadd.f32 %v3810_v5, %v1145_v43 }
 0x284   : > { %3811 = vst [vmem:[#allocation12_spill] sm:$0xff] %v3173_v23  ;;  %v3179_v23 = vadd.f32 %v3810_v5, %v1112_v17  ;;  %v3188_v17 = vadd.f32 %v3810_v5, %v1115_v9  ;;  %v3206_v9 = vadd.f32 %v3810_v5, %v1121_v13  ;;  %v3227_v13 = vadd.f32 %v3810_v5, %v1128_v49 }
 0x285   : > { %3812 = vst [vmem:[#allocation13_spill] sm:$0xff] %v3176_v34  ;;  %v3185_v34 = vadd.f32 %v3810_v5, %v1114_v8  ;;  %v3200_v8 = vadd.f32 %v3810_v5, %v1119_v4  ;;  %v3221_v4 = vadd.f32 %v3810_v5, %v1126_v11  ;;  %v3242_v11 = vadd.f32 %v3810_v5, %v1133_v30 }
 0x286   : > { %3813 = vst [vmem:[#allocation14_spill] sm:$0xff] %v3179_v23  ;;  %v3191_v23 = vadd.f32 %v3810_v5, %v1116_v16  ;;  %v3212_v16 = vadd.f32 %v3810_v5, %v1123_v48  ;;  %v3233_v48 = vadd.f32 %v3810_v5, %v1130_v57  ;;  %v3248_v49 = vadd.f32 %v3810_v5, %v1135_v40 }
 0x287   : > { %3814 = vst [vmem:[#allocation15_spill] sm:$0xff] %v3182_v19  ;;  %v3197_v19 = vadd.f32 %v3810_v5, %v1118_v0  ;;  %v3218_v0 = vadd.f32 %v3810_v5, %v1125_v10  ;;  %v3239_v10 = vadd.f32 %v3810_v5, %v1132_v39  ;;  %v3254_v57 = vadd.f32 %v3810_v5, %v1137_v53 }
 0x288   : > { %3815 = vst [vmem:[#allocation16_spill] sm:$0xff] %v3185_v34  ;;  %v3203_v34 = vadd.f32 %v3810_v5, %v1120_v44  ;;  %v3224_v44 = vadd.f32 %v3810_v5, %v1127_v14  ;;  %v3245_v14 = vadd.f32 %v3810_v5, %v1134_v7  ;;  %v3260_v39 = vadd.f32 %v3810_v5, %v1139_v29 }
 0x289   : > { %3816 = vst [vmem:[#allocation17_spill] sm:$0xff] %v3188_v17  ;;  %v3209_v17 = vadd.f32 %v3810_v5, %v1122_v52  ;;  %v3230_v52 = vadd.f32 %v3810_v5, %v1129_v1  ;;  %v3251_v1 = vadd.f32 %v3810_v5, %v1136_v56  ;;  %v3263_v30 = vadd.f32 %v3810_v5, %v1140_v28 }
 0x28a   : > { %v3266_v7 = vadd.f32 %v3810_v5, %v1141_v33  ;;  %v3269_v40 = vadd.f32 %v3810_v5, %v1142_v36  ;;  %v3272_v56 = vadd.f32 %v3810_v5, %v1143_v37  ;;  %v3275_v53 = vadd.f32 %v3810_v5, %v1144_v58 }
 0x28b   : > { %v3281_v29 = vadd.f32 %v3810_v5, %v1146_v24  ;;  %v3284_v28 = vadd.f32 %v3810_v5, %v1147_v25  ;;  %v3287_v33 = vadd.f32 %v3810_v5, %v1148_v18  ;;  %v3290_v36 = vadd.f32 %v3810_v5, %v1149_v50 }
 0x28c   : > { %v3293_v37 = vadd.f32 %v3810_v5, %v1150_v62  ;;  %v3296_v58 = vadd.f32 %v3810_v5, %v1151_v47  ;;  %v3299_v43 = vadd.f32 %v3810_v5, %v1152_v12  ;;  %v3302_v24 = vadd.f32 %v3810_v5, %v1153_v51 }
 0x28d   : > { %v3305_v25 = vadd.f32 %v3810_v5, %v1154_v42  ;;  %v3308_v18 = vadd.f32 %v3810_v5, %v1155_v54  ;;  %v3311_v50 = vadd.f32 %v3810_v5, %v1156_v61  ;;  %v3314_v62 = vadd.f32 %v3810_v5, %v1157_v31 }
 0x28e   : > { %v3317_v47 = vadd.f32 %v3810_v5, %v1158_v22  ;;  %v3320_v12 = vadd.f32 %v3810_v5, %v1159_v27  ;;  %v3323_v51 = vadd.f32 %v3810_v5, %v1160_v32  ;;  %v3326_v42 = vadd.f32 %v3810_v5, %v1161_v46 }
 0x28f   : > { %v3329_v54 = vadd.f32 %v3810_v5, %v1162_v6  ;;  %v3332_v61 = vadd.f32 %v3810_v5, %v1163_v20  ;;  %v3335_v31 = vadd.f32 %v3810_v5, %v1164_v45  ;;  %v3338_v22 = vadd.f32 %v3810_v5, %v1165_v41  ;;  %v3826_v41 = vld [vmem:[#allocation36_spill] sm:$0xff] }
 0x290   : > { %v3341_v27 = vadd.f32 %v3810_v5, %v1166_v55  ;;  %v3344_v32 = vadd.f32 %v3810_v5, %v1167_v2  ;;  %v3347_v46 = vadd.f32 %v3810_v5, %v1168_v21  ;;  %v3350_v6 = vadd.f32 %v3810_v5, %v1169_v3  ;;  %v3828_v55 = vld [vmem:[#allocation24_spill] sm:$0xff] }
 0x291   : > { %3817 = vst [vmem:[#allocation18_spill] sm:$0xff] %v3332_v61  ;;  %v3353_v20 = vadd.f32 %v3810_v5, %v1170_v35  ;;  %v3356_v45 = vadd.f32 %v3810_v5, %v1171_v15  ;;  %v3830_v35 = vld [vmem:[#allocation13_spill] sm:$0xff]  ;;  %v3831_v15 = vld [vmem:[#allocation14_spill] sm:$0xff]  ;;  %vm1248_vm12 = vcmp.gt.f32.partialorder %v3191_v23, 0.0  ;;  %v1313_v61 = vmul.f32 0.01, %v3194_v59 }
 0x292   : > { %3818 = vst [vmem:[#allocation19_spill] sm:$0xff] %v3335_v31  ;;  %vm1243_vm7 = vcmp.gt.f32.partialorder %v3830_v35, 0.0  ;;  %vm1244_vm8 = vcmp.gt.f32.partialorder %v3831_v15, 0.0  ;;  %vm1249_vm13 = vcmp.gt.f32.partialorder %v3194_v59, 0.0  ;;  %vm1250_vm14 = vcmp.gt.f32.partialorder %v3197_v19, 0.0 }
 0x293   : > { %3819 = vst [vmem:[#allocation20_spill] sm:$0xff] %v3338_v22  ;;  %v3827_v22 = vld [vmem:[#allocation25_spill] sm:$0xff]  ;;  %vm1251_vm15 = vcmp.gt.f32.partialorder %v3200_v8, 0.0  ;;  %vm1252_vm0 = vcmp.gt.f32.partialorder %v3203_v34, 0.0  ;;  %vm1253_vm1 = vcmp.gt.f32.partialorder %v3206_v9, 0.0  ;;  %vm1254_vm2 = vcmp.gt.f32.partialorder %v3209_v17, 0.0 }
 0x294   : > { %3820 = vst [vmem:[#allocation21_spill] sm:$0xff] %v3341_v27  ;;  %v1041_v31 = vmul.f32 %v3827_v22, %v3826_v41  ;;  %v3834_v41 = vld [vmem:[#allocation17_spill] sm:$0xff]  ;;  %vm1255_vm3 = vcmp.gt.f32.partialorder %v3212_v16, 0.0  ;;  %vm1256_vm4 = vcmp.gt.f32.partialorder %v3215_v60, 0.0 }
 0x295   : > { %3821 = vst [vmem:[#allocation22_spill] sm:$0xff] %v3344_v32  ;;  %vm1247_vm11 = vcmp.gt.f32.partialorder %v3834_v41, 0.0 }
 0x296   : > { %3822 = vst [vmem:[#allocation23_spill] sm:$0xff] %v3347_v46  ;;  %v1109_v27 = vmul.f32 %v3828_v55, %v1041_v31  ;;  %v3829_v46 = vld [vmem:[#allocation12_spill] sm:$0xff]  ;;  %v3832_v31 = vld [vmem:[#allocation15_spill] sm:$0xff]  ;;  %v1311_v55 = vmul.f32 0.01, %v3834_v41 }
 0x297   : > { %3823 = vst [vmem:[#allocation30_spill] sm:$0xff] %v3350_v6  ;;  %v1306_v3 = vmul.f32 0.01, %v3829_v46  ;;  %vm1242_vm6 = vcmp.gt.f32.partialorder %v3829_v46, 0.0  ;;  %v1309_v22 = vmul.f32 0.01, %v3832_v31 }
 0x298   : > { %3824 = vst [vmem:[#allocation31_spill] sm:$0xff] %v3353_v20  ;;  %v1177_v2 = vadd.f32 %v3810_v5, %v1109_v27  ;;  %v1307_v20 = vmul.f32 0.01, %v3830_v35  ;;  %vm1245_vm9 = vcmp.gt.f32.partialorder %v3832_v31, 0.0  ;;  %v3833_v5 = vld [vmem:[#allocation16_spill] sm:$0xff] }
 0x299   : > { %3825 = vst [vmem:[#allocation32_spill] sm:$0xff] %v3356_v45  ;;  %v1308_v45 = vmul.f32 0.01, %v3831_v15  ;;  %v1310_v27 = vmul.f32 0.01, %v3833_v5  ;;  %vm1246_vm10 = vcmp.gt.f32.partialorder %v3833_v5, 0.0 }
 0x29a   : > { %vm1241_vm5 = vcmp.gt.f32.partialorder %v1177_v2, 0.0  ;;  %v1305_v32 = vmul.f32 0.01, %v1177_v2 }
 0x29b   : > { %v1372_v6 = vsel %vm1244_vm8, %v3831_v15, %v1308_v45  ;;  %v1315_v45 = vmul.f32 0.01, %v3200_v8  ;;  %v1316_v15 = vmul.f32 0.01, %v3203_v34  ;;  %vm1260_vm8 = vcmp.gt.f32.partialorder %v3227_v13, 0.0 }
 0x29c   : > { %v1369_v21 = vsel %vm1241_vm5, %v1177_v2, %v1305_v32  ;;  %v1370_v32 = vsel %vm1242_vm6, %v3829_v46, %v1306_v3  ;;  %v1371_v2 = vsel %vm1243_vm7, %v3830_v35, %v1307_v20  ;;  %v1373_v46 = vsel %vm1245_vm9, %v3832_v31, %v1309_v22  ;;  %1436 = vst [vmem:[%s3011_s17 + $0x18] sm:$0xff] %v1372_v6 }
 0x29d   : > { %1433 = vst [vmem:[%s3011_s17] sm:$0xff] %v1369_v21  ;;  %v1312_v21 = vmul.f32 0.01, %v3191_v23  ;;  %v1314_v3 = vmul.f32 0.01, %v3197_v19  ;;  %v1374_v20 = vsel %vm1246_vm10, %v3833_v5, %v1310_v27  ;;  %v1375_v35 = vsel %vm1247_vm11, %v3834_v41, %v1311_v55 }
 0x29e   : > { %1434 = vst [vmem:[%s3011_s17 + $0x8] sm:$0xff] %v1370_v32  ;;  %v1317_v22 = vmul.f32 0.01, %v3206_v9  ;;  %v1377_v5 = vsel %vm1249_vm13, %v3194_v59, %v1313_v61  ;;  %v1318_v6 = vmul.f32 0.01, %v3209_v17  ;;  %v1379_v32 = vsel %vm1251_vm15, %v3200_v8, %v1315_v45 }
 0x29f   : > { %1435 = vst [vmem:[%s3011_s17 + $0x10] sm:$0xff] %v1371_v2  ;;  %v1376_v31 = vsel %vm1248_vm12, %v3191_v23, %v1312_v21  ;;  %v1378_v27 = vsel %vm1250_vm14, %v3197_v19, %v1314_v3  ;;  %v1319_v23 = vmul.f32 0.01, %v3212_v16  ;;  %v1320_v59 = vmul.f32 0.01, %v3215_v60 }
 0x2a0   : > { %1437 = vst [vmem:[%s3011_s17 + $0x20] sm:$0xff] %v1373_v46  ;;  %v1380_v61 = vsel %vm1252_vm0, %v3203_v34, %v1316_v15  ;;  %v1321_v19 = vmul.f32 0.01, %v3218_v0  ;;  %v1381_v41 = vsel %vm1253_vm1, %v3206_v9, %v1317_v22  ;;  %vm1257_vm5 = vcmp.gt.f32.partialorder %v3218_v0, 0.0 }
 0x2a1   : > { %1438 = vst [vmem:[%s3011_s17 + $0x28] sm:$0xff] %v1374_v20  ;;  %v1322_v8 = vmul.f32 0.01, %v3221_v4  ;;  %v1382_v55 = vsel %vm1254_vm2, %v3209_v17, %v1318_v6  ;;  %vm1258_vm6 = vcmp.gt.f32.partialorder %v3221_v4, 0.0  ;;  %v1323_v34 = vmul.f32 0.01, %v3224_v44 }
 0x2a2   : > { %1439 = vst [vmem:[%s3011_s17 + $0x30] sm:$0xff] %v1375_v35  ;;  %v1383_v2 = vsel %vm1255_vm3, %v3212_v16, %v1319_v23  ;;  %vm1259_vm7 = vcmp.gt.f32.partialorder %v3224_v44, 0.0  ;;  %v1324_v9 = vmul.f32 0.01, %v3227_v13  ;;  %v1384_v21 = vsel %vm1256_vm4, %v3215_v60, %v1320_v59 }
 0x2a3   : > { %1440 = vst [vmem:[%s3011_s17 + $0x38] sm:$0xff] %v1376_v31  ;;  %v1325_v17 = vmul.f32 0.01, %v3230_v52  ;;  %v1385_v46 = vsel %vm1257_vm5, %v3218_v0, %v1321_v19  ;;  %vm1261_vm9 = vcmp.gt.f32.partialorder %v3230_v52, 0.0  ;;  %v1326_v16 = vmul.f32 0.01, %v3233_v48 }
 0x2a4   : > { %1441 = vst [vmem:[%s3011_s17 + $0x40] sm:$0xff] %v1377_v5  ;;  %v1386_v3 = vsel %vm1258_vm6, %v3221_v4, %v1322_v8  ;;  %vm1262_vm10 = vcmp.gt.f32.partialorder %v3233_v48, 0.0  ;;  %v1327_v60 = vmul.f32 0.01, %v3236_v26  ;;  %v1387_v20 = vsel %vm1259_vm7, %v3224_v44, %v1323_v34 }
 0x2a5   : > { %1442 = vst [vmem:[%s3011_s17 + $0x48] sm:$0xff] %v1378_v27  ;;  %vm1263_vm11 = vcmp.gt.f32.partialorder %v3236_v26, 0.0  ;;  %v1328_v0 = vmul.f32 0.01, %v3239_v10  ;;  %v1388_v45 = vsel %vm1260_vm8, %v3227_v13, %v1324_v9  ;;  %vm1264_vm12 = vcmp.gt.f32.partialorder %v3239_v10, 0.0 }
 0x2a6   : > { %1443 = vst [vmem:[%s3011_s17 + $0x50] sm:$0xff] %v1379_v32  ;;  %v1329_v4 = vmul.f32 0.01, %v3242_v11  ;;  %v1389_v35 = vsel %vm1261_vm9, %v3230_v52, %v1325_v17  ;;  %vm1265_vm13 = vcmp.gt.f32.partialorder %v3242_v11, 0.0  ;;  %v1330_v44 = vmul.f32 0.01, %v3245_v14 }
 0x2a7   : > { %1444 = vst [vmem:[%s3011_s17 + $0x58] sm:$0xff] %v1380_v61  ;;  %v1390_v15 = vsel %vm1262_vm10, %v3233_v48, %v1326_v16  ;;  %vm1266_vm14 = vcmp.gt.f32.partialorder %v3245_v14, 0.0  ;;  %v1331_v13 = vmul.f32 0.01, %v3248_v49  ;;  %v1391_v31 = vsel %vm1263_vm11, %v3236_v26, %v1327_v60 }
 0x2a8   : > { %1445 = vst [vmem:[%s3011_s17 + $0x60] sm:$0xff] %v1381_v41  ;;  %vm1267_vm15 = vcmp.gt.f32.partialorder %v3248_v49, 0.0  ;;  %v1332_v52 = vmul.f32 0.01, %v3251_v1  ;;  %v1392_v22 = vsel %vm1264_vm12, %v3239_v10, %v1328_v0  ;;  %vm1268_vm0 = vcmp.gt.f32.partialorder %v3251_v1, 0.0 }
 0x2a9   : > { %1446 = vst [vmem:[%s3011_s17 + $0x68] sm:$0xff] %v1382_v55  ;;  %v1333_v48 = vmul.f32 0.01, %v3254_v57  ;;  %v1393_v5 = vsel %vm1265_vm13, %v3242_v11, %v1329_v4  ;;  %vm1269_vm1 = vcmp.gt.f32.partialorder %v3254_v57, 0.0  ;;  %v1334_v26 = vmul.f32 0.01, %v3257_v38 }
 0x2aa   : > { %1447 = vst [vmem:[%s3011_s17 + $0x70] sm:$0xff] %v1383_v2  ;;  %v1394_v6 = vsel %vm1266_vm14, %v3245_v14, %v1330_v44  ;;  %vm1270_vm2 = vcmp.gt.f32.partialorder %v3257_v38, 0.0  ;;  %v1335_v10 = vmul.f32 0.01, %v3260_v39  ;;  %v1395_v27 = vsel %vm1267_vm15, %v3248_v49, %v1331_v13 }
 0x2ab   : > { %1448 = vst [vmem:[%s3011_s17 + $0x78] sm:$0xff] %v1384_v21  ;;  %vm1271_vm3 = vcmp.gt.f32.partialorder %v3260_v39, 0.0  ;;  %v1336_v11 = vmul.f32 0.01, %v3263_v30  ;;  %v1396_v23 = vsel %vm1268_vm0, %v3251_v1, %v1332_v52  ;;  %vm1272_vm4 = vcmp.gt.f32.partialorder %v3263_v30, 0.0 }
 0x2ac   : > { %1449 = vst [vmem:[%s3011_s17 + $0x80] sm:$0xff] %v1385_v46  ;;  %v1337_v14 = vmul.f32 0.01, %v3266_v7  ;;  %v1397_v32 = vsel %vm1269_vm1, %v3254_v57, %v1333_v48  ;;  %vm1273_vm5 = vcmp.gt.f32.partialorder %v3266_v7, 0.0  ;;  %v1338_v49 = vmul.f32 0.01, %v3269_v40 }
 0x2ad   : > { %1450 = vst [vmem:[%s3011_s17 + $0x88] sm:$0xff] %v1386_v3  ;;  %v1398_v59 = vsel %vm1270_vm2, %v3257_v38, %v1334_v26  ;;  %vm1274_vm6 = vcmp.gt.f32.partialorder %v3269_v40, 0.0  ;;  %v1339_v1 = vmul.f32 0.01, %v3272_v56  ;;  %v1399_v61 = vsel %vm1271_vm3, %v3260_v39, %v1335_v10 }
 0x2ae   : > { %1451 = vst [vmem:[%s3011_s17 + $0x90] sm:$0xff] %v1387_v20  ;;  %vm1275_vm7 = vcmp.gt.f32.partialorder %v3272_v56, 0.0  ;;  %v1340_v57 = vmul.f32 0.01, %v3275_v53  ;;  %v1400_v19 = vsel %vm1272_vm4, %v3263_v30, %v1336_v11  ;;  %vm1276_vm8 = vcmp.gt.f32.partialorder %v3275_v53, 0.0 }
 0x2af   : > { %1452 = vst [vmem:[%s3011_s17 + $0x98] sm:$0xff] %v1388_v45  ;;  %v1341_v38 = vmul.f32 0.01, %v3278_v63  ;;  %v1401_v41 = vsel %vm1273_vm5, %v3266_v7, %v1337_v14  ;;  %vm1277_vm9 = vcmp.gt.f32.partialorder %v3278_v63, 0.0  ;;  %v1342_v39 = vmul.f32 0.01, %v3281_v29 }
 0x2b0   : > { %1453 = vst [vmem:[%s3011_s17 + $0xa0] sm:$0xff] %v1389_v35  ;;  %v1402_v8 = vsel %vm1274_vm6, %v3269_v40, %v1338_v49  ;;  %vm1278_vm10 = vcmp.gt.f32.partialorder %v3281_v29, 0.0  ;;  %v1343_v30 = vmul.f32 0.01, %v3284_v28  ;;  %v1403_v55 = vsel %vm1275_vm7, %v3272_v56, %v1339_v1  ;;  %v3843_v1 = vld [vmem:[#allocation32_spill] sm:$0xff] }
 0x2b1   : > { %1454 = vst [vmem:[%s3011_s17 + $0xa8] sm:$0xff] %v1390_v15  ;;  %vm1279_vm11 = vcmp.gt.f32.partialorder %v3284_v28, 0.0  ;;  %v1344_v7 = vmul.f32 0.01, %v3287_v33  ;;  %v1404_v34 = vsel %vm1276_vm8, %v3275_v53, %v1340_v57  ;;  %vm1280_vm12 = vcmp.gt.f32.partialorder %v3287_v33, 0.0 }
 0x2b2   : > { %1455 = vst [vmem:[%s3011_s17 + $0xb0] sm:$0xff] %v1391_v31  ;;  %v1345_v40 = vmul.f32 0.01, %v3290_v36  ;;  %v1405_v2 = vsel %vm1277_vm9, %v3278_v63, %v1341_v38  ;;  %vm1281_vm13 = vcmp.gt.f32.partialorder %v3290_v36, 0.0  ;;  %v1346_v56 = vmul.f32 0.01, %v3293_v37 }
 0x2b3   : > { %1456 = vst [vmem:[%s3011_s17 + $0xb8] sm:$0xff] %v1392_v22  ;;  %v1406_v9 = vsel %vm1278_vm10, %v3281_v29, %v1342_v39  ;;  %vm1282_vm14 = vcmp.gt.f32.partialorder %v3293_v37, 0.0  ;;  %v1347_v53 = vmul.f32 0.01, %v3296_v58  ;;  %v1407_v21 = vsel %vm1279_vm11, %v3284_v28, %v1343_v30 }
 0x2b4   : > { %1457 = vst [vmem:[%s3011_s17 + $0xc0] sm:$0xff] %v1393_v5  ;;  %vm1283_vm15 = vcmp.gt.f32.partialorder %v3296_v58, 0.0  ;;  %v1348_v63 = vmul.f32 0.01, %v3299_v43  ;;  %v1408_v17 = vsel %vm1280_vm12, %v3287_v33, %v1344_v7  ;;  %vm1284_vm0 = vcmp.gt.f32.partialorder %v3299_v43, 0.0 }
 0x2b5   : > { %1458 = vst [vmem:[%s3011_s17 + $0xc8] sm:$0xff] %v1394_v6  ;;  %v1349_v29 = vmul.f32 0.01, %v3302_v24  ;;  %v1409_v46 = vsel %vm1281_vm13, %v3290_v36, %v1345_v40  ;;  %vm1285_vm1 = vcmp.gt.f32.partialorder %v3302_v24, 0.0  ;;  %v1350_v28 = vmul.f32 0.01, %v3305_v25 }
 0x2b6   : > { %1459 = vst [vmem:[%s3011_s17 + $0xd0] sm:$0xff] %v1395_v27  ;;  %v1410_v16 = vsel %vm1282_vm14, %v3293_v37, %v1346_v56  ;;  %vm1286_vm2 = vcmp.gt.f32.partialorder %v3305_v25, 0.0  ;;  %v1351_v33 = vmul.f32 0.01, %v3308_v18  ;;  %v1411_v3 = vsel %vm1283_vm15, %v3296_v58, %v1347_v53 }
 0x2b7   : > { %1460 = vst [vmem:[%s3011_s17 + $0xd8] sm:$0xff] %v1396_v23  ;;  %vm1287_vm3 = vcmp.gt.f32.partialorder %v3308_v18, 0.0  ;;  %v1352_v36 = vmul.f32 0.01, %v3311_v50  ;;  %v1412_v60 = vsel %vm1284_vm0, %v3299_v43, %v1348_v63  ;;  %vm1288_vm4 = vcmp.gt.f32.partialorder %v3311_v50, 0.0 }
 0x2b8   : > { %1461 = vst [vmem:[%s3011_s17 + $0xe0] sm:$0xff] %v1397_v32  ;;  %v1353_v37 = vmul.f32 0.01, %v3314_v62  ;;  %v1413_v20 = vsel %vm1285_vm1, %v3302_v24, %v1349_v29  ;;  %vm1289_vm5 = vcmp.gt.f32.partialorder %v3314_v62, 0.0  ;;  %v1354_v58 = vmul.f32 0.01, %v3317_v47 }
 0x2b9   : > { %1462 = vst [vmem:[%s3011_s17 + $0xe8] sm:$0xff] %v1398_v59  ;;  %v1414_v0 = vsel %vm1286_vm2, %v3305_v25, %v1350_v28  ;;  %vm1290_vm6 = vcmp.gt.f32.partialorder %v3317_v47, 0.0  ;;  %v1355_v43 = vmul.f32 0.01, %v3320_v12  ;;  %v1415_v45 = vsel %vm1287_vm3, %v3308_v18, %v1351_v33  ;;  %v3842_v32 = vld [vmem:[#allocation31_spill] sm:$0xff] }
 0x2ba   : > { %1463 = vst [vmem:[%s3011_s17 + $0xf0] sm:$0xff] %v1399_v61  ;;  %vm1291_vm7 = vcmp.gt.f32.partialorder %v3320_v12, 0.0  ;;  %v1356_v24 = vmul.f32 0.01, %v3323_v51  ;;  %v1416_v4 = vsel %vm1288_vm4, %v3311_v50, %v1352_v36  ;;  %vm1292_vm8 = vcmp.gt.f32.partialorder %v3323_v51, 0.0  ;;  %v3835_v50 = vld [vmem:[#allocation18_spill] sm:$0xff] }
 0x2bb   : > { %1464 = vst [vmem:[%s3011_s17 + $0xf8] sm:$0xff] %v1400_v19  ;;  %v1357_v25 = vmul.f32 0.01, %v3326_v42  ;;  %v1417_v35 = vsel %vm1289_vm5, %v3314_v62, %v1353_v37  ;;  %vm1293_vm9 = vcmp.gt.f32.partialorder %v3326_v42, 0.0  ;;  %v1358_v18 = vmul.f32 0.01, %v3329_v54 }
 0x2bc   : > { %1465 = vst [vmem:[%s3011_s17 + $0x100] sm:$0xff] %v1401_v41  ;;  %v1418_v44 = vsel %vm1290_vm6, %v3317_v47, %v1354_v58  ;;  %vm1294_vm10 = vcmp.gt.f32.partialorder %v3329_v54, 0.0  ;;  %v1359_v15 = vmul.f32 0.01, %v3835_v50  ;;  %v1419_v13 = vsel %vm1291_vm7, %v3320_v12, %v1355_v43  ;;  %v3836_v62 = vld [vmem:[#allocation19_spill] sm:$0xff]  ;;  %v3837_v47 = vld [vmem:[#allocation20_spill] sm:$0xff] }
 0x2bd   : > { %1466 = vst [vmem:[%s3011_s17 + $0x108] sm:$0xff] %v1402_v8  ;;  %vm1295_vm11 = vcmp.gt.f32.partialorder %v3835_v50, 0.0  ;;  %v1360_v31 = vmul.f32 0.01, %v3836_v62  ;;  %v1420_v52 = vsel %vm1292_vm8, %v3323_v51, %v1356_v24  ;;  %vm1296_vm12 = vcmp.gt.f32.partialorder %v3836_v62, 0.0  ;;  %v3838_v12 = vld [vmem:[#allocation21_spill] sm:$0xff] }
 0x2be   : > { %1467 = vst [vmem:[%s3011_s17 + $0x110] sm:$0xff] %v1403_v55  ;;  %v1361_v22 = vmul.f32 0.01, %v3837_v47  ;;  %v1421_v48 = vsel %vm1293_vm9, %v3326_v42, %v1357_v25  ;;  %vm1297_vm13 = vcmp.gt.f32.partialorder %v3837_v47, 0.0  ;;  %v1362_v5 = vmul.f32 0.01, %v3838_v12 }
 0x2bf   : > { %1468 = vst [vmem:[%s3011_s17 + $0x118] sm:$0xff] %v1404_v34  ;;  %v1422_v26 = vsel %vm1294_vm10, %v3329_v54, %v1358_v18  ;;  %vm1298_vm14 = vcmp.gt.f32.partialorder %v3838_v12, 0.0  ;;  %v3839_v51 = vld [vmem:[#allocation22_spill] sm:$0xff]  ;;  %v1423_v10 = vsel %vm1295_vm11, %v3835_v50, %v1359_v15  ;;  %v3840_v42 = vld [vmem:[#allocation23_spill] sm:$0xff]  ;;  %v1424_v11 = vsel %vm1296_vm12, %v3836_v62, %v1360_v31 }
 0x2c0   : > { %1469 = vst [vmem:[%s3011_s17 + $0x120] sm:$0xff] %v1405_v2  ;;  %v1363_v6 = vmul.f32 0.01, %v3839_v51  ;;  %vm1299_vm15 = vcmp.gt.f32.partialorder %v3839_v51, 0.0  ;;  %v1364_v27 = vmul.f32 0.01, %v3840_v42  ;;  %v1425_v14 = vsel %vm1297_vm13, %v3837_v47, %v1361_v22 }
 0x2c1   : > { %1470 = vst [vmem:[%s3011_s17 + $0x128] sm:$0xff] %v1406_v9  ;;  %vm1300_vm0 = vcmp.gt.f32.partialorder %v3840_v42, 0.0  ;;  %v3841_v54 = vld [vmem:[#allocation30_spill] sm:$0xff]  ;;  %v1366_v49 = vmul.f32 0.01, %v3842_v32  ;;  %v1426_v59 = vsel %vm1298_vm14, %v3838_v12, %v1362_v5  ;;  %vm1302_vm2 = vcmp.gt.f32.partialorder %v3842_v32, 0.0 }
 0x2c2   : > { %1471 = vst [vmem:[%s3011_s17 + $0x130] sm:$0xff] %v1407_v21  ;;  %v1365_v23 = vmul.f32 0.01, %v3841_v54  ;;  %vm1301_vm1 = vcmp.gt.f32.partialorder %v3841_v54, 0.0  ;;  %v1367_v61 = vmul.f32 0.01, %v3843_v1  ;;  %v1427_v57 = vsel %vm1299_vm15, %v3839_v51, %v1363_v6 }
 0x2c3   : > { %1472 = vst [vmem:[%s3011_s17 + $0x138] sm:$0xff] %v1408_v17  ;;  %vm1303_vm3 = vcmp.gt.f32.partialorder %v3843_v1, 0.0  ;;  %v1428_v19 = vsel %vm1300_vm0, %v3840_v42, %v1364_v27  ;;  %v1430_v41 = vsel %vm1302_vm2, %v3842_v32, %v1366_v49 }
 0x2c4   : > { %1473 = vst [vmem:[%s3011_s17 + $0x140] sm:$0xff] %v1409_v46  ;;  %v1429_v38 = vsel %vm1301_vm1, %v3841_v54, %v1365_v23  ;;  %v1431_v39 = vsel %vm1303_vm3, %v3843_v1, %v1367_v61 }
 0x2c5   : > { %1474 = vst [vmem:[%s3011_s17 + $0x148] sm:$0xff] %v1410_v16 }
 0x2c6   : > { %1475 = vst [vmem:[%s3011_s17 + $0x150] sm:$0xff] %v1411_v3 }
 0x2c7   : > { %1476 = vst [vmem:[%s3011_s17 + $0x158] sm:$0xff] %v1412_v60 }
 0x2c8   : > { %1477 = vst [vmem:[%s3011_s17 + $0x160] sm:$0xff] %v1413_v20 }
 0x2c9   : > { %1478 = vst [vmem:[%s3011_s17 + $0x168] sm:$0xff] %v1414_v0 }
 0x2ca   : > { %1479 = vst [vmem:[%s3011_s17 + $0x170] sm:$0xff] %v1415_v45 }
 0x2cb   : > { %1480 = vst [vmem:[%s3011_s17 + $0x178] sm:$0xff] %v1416_v4 }
 0x2cc   : > { %1481 = vst [vmem:[%s3011_s17 + $0x180] sm:$0xff] %v1417_v35 }
 0x2cd   : > { %1482 = vst [vmem:[%s3011_s17 + $0x188] sm:$0xff] %v1418_v44 }
 0x2ce   : > { %1483 = vst [vmem:[%s3011_s17 + $0x190] sm:$0xff] %v1419_v13 }
 0x2cf   : > { %1484 = vst [vmem:[%s3011_s17 + $0x198] sm:$0xff] %v1420_v52 }
 0x2d0   : > { %1485 = vst [vmem:[%s3011_s17 + $0x1a0] sm:$0xff] %v1421_v48 }
 0x2d1   : > { %1486 = vst [vmem:[%s3011_s17 + $0x1a8] sm:$0xff] %v1422_v26 }
 0x2d2   : > { %1487 = vst [vmem:[%s3011_s17 + $0x1b0] sm:$0xff] %v1423_v10 }
 0x2d3   : > { %1488 = vst [vmem:[%s3011_s17 + $0x1b8] sm:$0xff] %v1424_v11 }
 0x2d4   : > { %1489 = vst [vmem:[%s3011_s17 + $0x1c0] sm:$0xff] %v1425_v14 }
 0x2d5   : > { %1490 = vst [vmem:[%s3011_s17 + $0x1c8] sm:$0xff] %v1426_v59 }
 0x2d6   : > { %1491 = vst [vmem:[%s3011_s17 + $0x1d0] sm:$0xff] %v1427_v57 }
 0x2d7   : > { %1492 = vst [vmem:[%s3011_s17 + $0x1d8] sm:$0xff] %v1428_v19 }
 0x2d8   : > { %1493 = vst [vmem:[%s3011_s17 + $0x1e0] sm:$0xff] %v1429_v38 }
 0x2d9   : > { %1494 = vst [vmem:[%s3011_s17 + $0x1e8] sm:$0xff] %v1430_v41 }
 0x2da   : > { %1495 = vst [vmem:[%s3011_s17 + $0x1f0] sm:$0xff] %v1431_v39 }
 0x2db   : > { %1994 = shalt.err (!%p1991_p10)
}
 0x2dc   : > { %s2043_s28 = smov 128   ;;  %s2044_s10 = smov 8  }
 0x2dd   : > { %1844 = dma.vmem_to_hbm [thread:$0]  (%p2144_p3), %s1511_s14, 8192, %s1513_s11, %s1498_s8, %s2043_s28, %s2043_s28, %s2044_s10  }
 0x2de PF: > { %s1527_s17 = sand.u32 1, %s2025_s18   ;;  %p3844_p12 = scmp.ge.s32.totalorder %s2037_s21, 2 }
 0x2df   : > { %s1528_s16 = scalar_lea.sflag [#allocation4], %s1527_s17 }
 0x2e0   : > { %p1855_p13 = pnand %p3844_p12, %p2110_p6 }
 0x2e2   : > { %p1856_p0 = pneg %p1855_p13 }
 0x2e4   : > { %2020 = dma.done.wait (%p1856_p0), %s1528_s16, 8192  }
 0x2e5   : > { %2022 = vsyncadd (%p1856_p0), %s1528_s16, 4294959104  ;;  %p19_p5 = scmp.ge.s32.totalorder %s2128_s7, 4   ;;  %s3845_s18 = smov %s2029_s19 }
 0x2e6   : > { %s3846_s19 = smov %s2033_s20  ;;  %s3847_s20 = smov %s2140_s12 }
 0x2e7   : > { %s3848_s21 = smov %s2128_s7  ;;  %21 = sbr.rel (!%p19_p5) target bundleno = 6 (0x6), region = 89 }
 0x2ec   :  { %1534 = vsyncpa [#allocation3], 1 }
 0x2ed   :  { %1536 = vsyncpa [#allocation3 + $0x1], 1 }
 0x2ee   :  { %1537 = vsyncpa [#allocation6], 1 }
 0x2ef   :  { %1538 = vsyncpa [#allocation4], 1 }
 0x2f0   :  { %1540 = vsyncpa [#allocation4 + $0x1], 1 }

</bundles_post_ra>
